<compile_context>
chip_gen: v7x
topology: tpu7x:2x2x1
jax: 0.10.0
libtpu: 0.0.40
codegen_flags: <defaults>
</compile_context>

<pallas_src>
import functools

import jax
import jax.numpy as jnp
from jax import lax
from jax.experimental import pallas as pl
from jax.experimental.pallas import tpu as pltpu


def _context_kernel(x_ref, wkv_ref, wout_ref, w_ref, m_sc, l_sc, acc_sc,
                    *, heads, dim_head):
    """Pass 1: per-batch fused projection W_h = (scale*wout_h) @ softmax-context_h^T.

    x_ref:    (1, C, tn)            input tile (f32, cast to bf16 for MXU)
    wkv_ref:  (2*hidden, C)         k/v projection weights (bf16)
    wout_ref: (heads, C, D)         to_out weight, scale pre-folded (bf16)
    w_ref:    (1, heads, C, D)      output: fused per-head matrices (f32)
    scratch:  m_sc/l_sc (hidden,1)  online-softmax running max / sum-exp
              acc_sc (hidden, D)    running (unnormalized) per-head context
    """
    hidden = heads * dim_head
    n_idx = pl.program_id(1)

    @pl.when(n_idx == 0)
    def _init():
        m_sc[...] = jnp.full(m_sc.shape, -jnp.inf, m_sc.dtype)
        l_sc[...] = jnp.zeros(l_sc.shape, l_sc.dtype)
        acc_sc[...] = jnp.zeros(acc_sc.shape, acc_sc.dtype)

    x = x_ref[0].astype(jnp.bfloat16)                                  # (C, tn)
    kv = jnp.dot(wkv_ref[...], x,
                 preferred_element_type=jnp.float32)                   # (2*hidden, tn)
    k = kv[:hidden, :]                                                 # (hidden, tn) f32
    v = kv[hidden:, :].astype(jnp.bfloat16)                            # (hidden, tn) bf16

    # Online softmax over the spatial axis (each of the `hidden` k-rows).
    m_prev = m_sc[...]
    m_new = jnp.maximum(m_prev, jnp.max(k, axis=-1, keepdims=True))    # (hidden, 1)
    alpha = jnp.exp(m_prev - m_new)                                    # (hidden, 1)
    p = jnp.exp(k - m_new)                                             # (hidden, tn) f32
    l_sc[...] = alpha * l_sc[...] + jnp.sum(p, axis=-1, keepdims=True)
    m_sc[...] = m_new
    p = p.astype(jnp.bfloat16)

    for h in range(heads):
        lo = h * dim_head
        hi = lo + dim_head
        # ctx_h[d, e] = sum_n p_h[d, n] * v_h[e, n]  (contract over N, no transpose)
        ctx_h = lax.dot_general(p[lo:hi, :], v[lo:hi, :],
                                (((1,), (1,)), ((), ())),
                                preferred_element_type=jnp.float32)    # (D, D)
        acc_sc[lo:hi, :] = alpha[lo:hi, :] * acc_sc[lo:hi, :] + ctx_h

    @pl.when(n_idx == pl.num_programs(1) - 1)
    def _finalize():
        inv_l = pl.reciprocal(l_sc[...], approx=True)                  # (hidden, 1)
        ctx = (acc_sc[...] * inv_l).astype(jnp.bfloat16)               # (hidden, D)
        for h in range(heads):
            lo = h * dim_head
            hi = lo + dim_head
            # W_h[c, d] = sum_e (scale*wout_h)[c, e] * ctx_h[d, e]
            w_h = lax.dot_general(wout_ref[h], ctx[lo:hi, :],
                                  (((1,), (1,)), ((), ())),
                                  preferred_element_type=jnp.float32)  # (C, D)
            w_ref[0, h] = w_h.astype(w_ref.dtype)


def _output_kernel(x_ref, wq_ref, w_ref, b_ref, o_ref):
    """Pass 2: y_tile = W @ (Wq @ x_tile) + b  (contraction over hidden)."""
    x = x_ref[0].astype(jnp.bfloat16)                                  # (C, tn)
    q = jnp.dot(wq_ref[...], x,
                preferred_element_type=jnp.float32)                    # (hidden, tn)
    y = jnp.dot(w_ref[0].astype(jnp.bfloat16), q.astype(jnp.bfloat16),
                preferred_element_type=jnp.float32)                    # (C, tn)
    o_ref[0] = (y + b_ref[...]).astype(o_ref.dtype)


def _pick_tile_n(n, cap):
    """Largest multiple of 128 that divides n and is <= cap; else full n."""
    if n % 128 != 0:
        return n
    tn = 128
    for cand in range(128, min(cap, n) + 1, 128):
        if n % cand == 0:
            tn = cand
    return tn


def linear_attention_pallas(x, w_qkv, w_out, b_out, *, heads, dim_head,
                            max_tile_n=1024):
    """x: (B, C, H, W) float32. Returns (B, C, H, W)."""
    B, C, H, Wd = x.shape
    N = H * Wd
    hidden = heads * dim_head
    scale = dim_head ** (-0.5)

    x_flat = x.reshape(B, C, N)                              # (B, C, N)
    wqkv_mat = w_qkv.reshape(3 * hidden, C)
    wq = wqkv_mat[:hidden].astype(jnp.bfloat16)              # (hidden, C)
    wkv = wqkv_mat[hidden:].astype(jnp.bfloat16)             # (2*hidden, C)
    # Fold the softmax scale of q into the to_out weight (free scalar ride-along).
    wout_h = (w_out.reshape(C, heads, dim_head) * scale)
    wout_h = jnp.transpose(wout_h, (1, 0, 2)).astype(jnp.bfloat16)   # (heads, C, D)
    bias = b_out.reshape(C, 1).astype(jnp.float32)

    tn = _pick_tile_n(N, max_tile_n)
    n_tiles = N // tn

    # ---- pass 1: fused per-batch projection matrices ----
    ctx_kernel = functools.partial(_context_kernel, heads=heads, dim_head=dim_head)
    w_heads = pl.pallas_call(
        ctx_kernel,
        out_shape=jax.ShapeDtypeStruct((B, heads, C, dim_head), jnp.float32),
        grid_spec=pltpu.PrefetchScalarGridSpec(
            num_scalar_prefetch=0,
            grid=(B, n_tiles),
            in_specs=[
                pl.BlockSpec((1, C, tn), lambda b, n: (b, 0, n)),
                pl.BlockSpec((2 * hidden, C), lambda b, n: (0, 0)),
                pl.BlockSpec((heads, C, dim_head), lambda b, n: (0, 0, 0)),
            ],
            out_specs=pl.BlockSpec((1, heads, C, dim_head),
                                   lambda b, n: (b, 0, 0, 0)),
            scratch_shapes=[
                pltpu.VMEM((hidden, 1), jnp.float32),       # running max
                pltpu.VMEM((hidden, 1), jnp.float32),       # running sum-exp
                pltpu.VMEM((hidden, dim_head), jnp.float32),  # context accumulator
            ],
        ),
        compiler_params=pltpu.CompilerParams(
            dimension_semantics=("parallel", "arbitrary")),
    )(x_flat, wkv, wout_h)

    # Tiny glue (B*C*hidden floats): lay W out as (B, C, hidden) for pass 2.
    w_mat = jnp.transpose(w_heads, (0, 2, 1, 3)).reshape(B, C, hidden)

    # ---- pass 2: per-tile output projection ----
    out_flat = pl.pallas_call(
        _output_kernel,
        out_shape=jax.ShapeDtypeStruct((B, C, N), x.dtype),
        grid_spec=pltpu.PrefetchScalarGridSpec(
            num_scalar_prefetch=0,
            grid=(B, n_tiles),
            in_specs=[
                pl.BlockSpec((1, C, tn), lambda b, n: (b, 0, n)),
                pl.BlockSpec((hidden, C), lambda b, n: (0, 0)),
                pl.BlockSpec((1, C, hidden), lambda b, n: (b, 0, 0)),
                pl.BlockSpec((C, 1), lambda b, n: (0, 0)),
            ],
            out_specs=pl.BlockSpec((1, C, tn), lambda b, n: (b, 0, n)),
        ),
        compiler_params=pltpu.CompilerParams(
            dimension_semantics=("parallel", "parallel")),
    )(x_flat, wq, w_mat, bias)

    return out_flat.reshape(B, C, H, Wd)


def linear_attention_ref(x, w_qkv, w_out, b_out, *, heads, dim_head):
    """Pure-JAX f32 reference mirroring the PyTorch forward."""
    B, C, H, Wd = x.shape
    N = H * Wd
    hidden = heads * dim_head
    scale = dim_head ** (-0.5)

    x_flat = x.reshape(B, C, N)
    qkv = jnp.einsum('oc,bcn->bon', w_qkv.reshape(3 * hidden, C), x_flat)
    q, k, v = jnp.split(qkv, 3, axis=1)                      # (B, hidden, N)
    q = q.reshape(B, heads, dim_head, N) * scale
    k = k.reshape(B, heads, dim_head, N)
    v = v.reshape(B, heads, dim_head, N)
    k = jax.nn.softmax(k, axis=-1)
    context = jnp.einsum('bhdn,bhen->bhde', k, v)
    out = jnp.einsum('bhde,bhdn->bhen', context, q)
    out = out.reshape(B, hidden, N)
    y = jnp.einsum('ch,bhn->bcn', w_out.reshape(C, hidden), out) + b_out[None, :, None]
    return y.reshape(B, C, H, Wd)


if __name__ == "__main__":
    B, C, H, W = 2, 4, 16, 16
    heads, dim_head = 4, 32
    hidden = heads * dim_head

    key = jax.random.PRNGKey(0)
    k0, k1, k2, k3 = jax.random.split(key, 4)

    x = jax.random.normal(k0, (B, C, H, W), dtype=jnp.float32)
    # Conv2d(dim, hidden*3, 1, bias=False) weight: (3*hidden, dim, 1, 1)
    w_qkv = jax.random.normal(k1, (3 * hidden, C, 1, 1), dtype=jnp.float32) * 0.1
    # Conv2d(hidden, dim, 1) weight: (dim, hidden, 1, 1), bias: (dim,)
    w_out = jax.random.normal(k2, (C, hidden, 1, 1), dtype=jnp.float32) * 0.1
    b_out = jax.random.normal(k3, (C,), dtype=jnp.float32) * 0.1

    y = linear_attention_pallas(x, w_qkv, w_out, b_out,
                                heads=heads, dim_head=dim_head)
    y = jax.block_until_ready(y)

    y_ref = linear_attention_ref(x, w_qkv, w_out, b_out,
                                 heads=heads, dim_head=dim_head)
    assert y.shape == (B, C, H, W)
    # bf16 MXU operands with f32 accumulation -> slightly looser tolerance vs f32 ref
    assert jnp.allclose(y, y_ref, atol=1e-2, rtol=1e-2), "mismatch vs reference"

    print("KERNEL_OK")
</pallas_src>

<mosaic_0001>
module attributes {stable_mosaic.version = 11 : i64} {
  func.func @_context_kernel(%arg0: i32, %arg1: i32, %arg2: memref<1x4x256xf32, #tpu.memory_space<vmem>>, %arg3: memref<256x4xbf16, #tpu.memory_space<vmem>>, %arg4: memref<4x4x32xbf16, #tpu.memory_space<vmem>>, %arg5: memref<1x4x4x32xf32, #tpu.memory_space<vmem>>, %arg6: memref<128x1xf32, #tpu.memory_space<vmem>>, %arg7: memref<128x1xf32, #tpu.memory_space<vmem>>, %arg8: memref<128x32xf32, #tpu.memory_space<vmem>>) attributes {dimension_semantics = [#tpu.dimension_semantics<parallel>, #tpu.dimension_semantics<arbitrary>], iteration_bounds = array<i64: 2, 1>, scalar_prefetch = 0 : i64, scratch_operands = 3 : i64, tpu.core_type = #tpu.core_type<tc>, window_params = [{transform_indices = @transform_0, window_bounds = array<i64: 1, 4, 256>}, {pipeline_mode = #tpu.pipeline_mode<synchronous>, transform_indices = @transform_1, window_bounds = array<i64: 256, 4>}, {pipeline_mode = #tpu.pipeline_mode<synchronous>, transform_indices = @transform_2, window_bounds = array<i64: 4, 4, 32>}, {transform_indices = @transform_3, window_bounds = array<i64: 1, 4, 4, 32>}]} {
    %c0_i32 = arith.constant 0 : i32
    %0 = arith.cmpi eq, %arg1, %c0_i32 : i32
    %1 = arith.extui %0 : i1 to i32
    %c0_i32_0 = arith.constant 0 : i32
    %2 = arith.cmpi ne, %1, %c0_i32_0 : i32
    scf.if %2 {
      %cst_34 = arith.constant 0xFF800000 : f32
      %67 = vector.broadcast %cst_34 : f32 to vector<128x1xf32>
      %c0_35 = arith.constant 0 : index
      %c0_36 = arith.constant 0 : index
      %68 = vector.load %arg6[%c0_35, %c0_36] : memref<128x1xf32, #tpu.memory_space<vmem>>, vector<128x1xf32>
      tpu.vector_store %arg6[%c0_35, %c0_36], %67 {strides = array<i32>} : memref<128x1xf32, #tpu.memory_space<vmem>>, vector<128x1xf32>,
      %cst_37 = arith.constant 0.000000e+00 : f32
      %69 = vector.broadcast %cst_37 : f32 to vector<128x1xf32>
      %c0_38 = arith.constant 0 : index
      %c0_39 = arith.constant 0 : index
      %70 = vector.load %arg7[%c0_38, %c0_39] : memref<128x1xf32, #tpu.memory_space<vmem>>, vector<128x1xf32>
      tpu.vector_store %arg7[%c0_38, %c0_39], %69 {strides = array<i32>} : memref<128x1xf32, #tpu.memory_space<vmem>>, vector<128x1xf32>,
      %cst_40 = arith.constant 0.000000e+00 : f32
      %71 = vector.broadcast %cst_40 : f32 to vector<128x32xf32>
      %c0_41 = arith.constant 0 : index
      %c0_42 = arith.constant 0 : index
      %72 = vector.load %arg8[%c0_41, %c0_42] : memref<128x32xf32, #tpu.memory_space<vmem>>, vector<128x32xf32>
      tpu.vector_store %arg8[%c0_41, %c0_42], %71 {strides = array<i32>} : memref<128x32xf32, #tpu.memory_space<vmem>>, vector<128x32xf32>,
    } else {
    }
    %c0 = arith.constant 0 : index
    %c0_1 = arith.constant 0 : index
    %c0_2 = arith.constant 0 : index
    %3 = vector.load %arg2[%c0, %c0_1, %c0_2] : memref<1x4x256xf32, #tpu.memory_space<vmem>>, vector<1x4x256xf32>
    %4 = vector.shape_cast %3 : vector<1x4x256xf32> to vector<4x256xf32>
    %5 = arith.truncf %4 : vector<4x256xf32> to vector<4x256xbf16>
    %c0_3 = arith.constant 0 : index
    %c0_4 = arith.constant 0 : index
    %6 = vector.load %arg3[%c0_3, %c0_4] : memref<256x4xbf16, #tpu.memory_space<vmem>>, vector<256x4xbf16>
    %cst = arith.constant dense<0.000000e+00> : vector<256x256xf32>
    %7 = tpu.matmul %6, %5, %cst {dimension_numbers = #tpu.dot_dimension_numbers<[1], [0], [0], [1], [0, 0, 1, 1], [], []>} : vector<256x4xbf16>, vector<4x256xbf16>, vector<256x256xf32> -> vector<256x256xf32>
    %8 = vector.extract_strided_slice %7 {offsets = [0, 0], sizes = [128, 256], strides = [1, 1]} : vector<256x256xf32> to vector<128x256xf32>
    %9 = vector.extract_strided_slice %7 {offsets = [128, 0], sizes = [128, 256], strides = [1, 1]} : vector<256x256xf32> to vector<128x256xf32>
    %10 = arith.truncf %9 : vector<128x256xf32> to vector<128x256xbf16>
    %c0_5 = arith.constant 0 : index
    %c0_6 = arith.constant 0 : index
    %11 = vector.load %arg6[%c0_5, %c0_6] : memref<128x1xf32, #tpu.memory_space<vmem>>, vector<128x1xf32>
    %cst_7 = arith.constant dense<0xFF800000> : vector<128xf32>
    %12 = vector.multi_reduction <maximumf>, %8, %cst_7 [1] : vector<128x256xf32> to vector<128xf32>
    %13 = vector.shape_cast %12 : vector<128xf32> to vector<128x1xf32>
    %14 = arith.maximumf %11, %13 : vector<128x1xf32>
    %15 = arith.subf %11, %14 : vector<128x1xf32>
    %16 = math.exp %15 : vector<128x1xf32>
    %17 = vector.broadcast %14 : vector<128x1xf32> to vector<128x256xf32>
    %18 = arith.subf %8, %17 : vector<128x256xf32>
    %19 = math.exp %18 : vector<128x256xf32>
    %c0_8 = arith.constant 0 : index
    %c0_9 = arith.constant 0 : index
    %20 = vector.load %arg7[%c0_8, %c0_9] : memref<128x1xf32, #tpu.memory_space<vmem>>, vector<128x1xf32>
    %21 = arith.mulf %16, %20 : vector<128x1xf32>
    %cst_10 = arith.constant dense<0.000000e+00> : vector<128xf32>
    %22 = vector.multi_reduction <add>, %19, %cst_10 [1] : vector<128x256xf32> to vector<128xf32>
    %23 = vector.shape_cast %22 : vector<128xf32> to vector<128x1xf32>
    %24 = arith.addf %21, %23 : vector<128x1xf32>
    %c0_11 = arith.constant 0 : index
    %c0_12 = arith.constant 0 : index
    %25 = vector.load %arg7[%c0_11, %c0_12] : memref<128x1xf32, #tpu.memory_space<vmem>>, vector<128x1xf32>
    tpu.vector_store %arg7[%c0_11, %c0_12], %24 {strides = array<i32>} : memref<128x1xf32, #tpu.memory_space<vmem>>, vector<128x1xf32>,
    %c0_13 = arith.constant 0 : index
    %c0_14 = arith.constant 0 : index
    %26 = vector.load %arg6[%c0_13, %c0_14] : memref<128x1xf32, #tpu.memory_space<vmem>>, vector<128x1xf32>
    tpu.vector_store %arg6[%c0_13, %c0_14], %14 {strides = array<i32>} : memref<128x1xf32, #tpu.memory_space<vmem>>, vector<128x1xf32>,
    %27 = arith.truncf %19 : vector<128x256xf32> to vector<128x256xbf16>
    %28 = vector.extract_strided_slice %27 {offsets = [0, 0], sizes = [32, 256], strides = [1, 1]} : vector<128x256xbf16> to vector<32x256xbf16>
    %29 = vector.extract_strided_slice %10 {offsets = [0, 0], sizes = [32, 256], strides = [1, 1]} : vector<128x256xbf16> to vector<32x256xbf16>
    %cst_15 = arith.constant dense<0.000000e+00> : vector<32x32xf32>
    %30 = tpu.matmul %28, %29, %cst_15 {dimension_numbers = #tpu.dot_dimension_numbers<[1], [1], [0], [0], [0, 0, 1, 0], [], []>} : vector<32x256xbf16>, vector<32x256xbf16>, vector<32x32xf32> -> vector<32x32xf32>
    %31 = vector.extract_strided_slice %16 {offsets = [0, 0], sizes = [32, 1], strides = [1, 1]} : vector<128x1xf32> to vector<32x1xf32>
    %c0_16 = arith.constant 0 : index
    %c0_17 = arith.constant 0 : index
    %32 = vector.load %arg8[%c0_16, %c0_17] : memref<128x32xf32, #tpu.memory_space<vmem>>, vector<32x32xf32>
    %33 = vector.broadcast %31 : vector<32x1xf32> to vector<32x32xf32>
    %34 = arith.mulf %33, %32 : vector<32x32xf32>
    %35 = arith.addf %34, %30 : vector<32x32xf32>
    %c0_18 = arith.constant 0 : index
    %c0_19 = arith.constant 0 : index
    %36 = vector.load %arg8[%c0_18, %c0_19] : memref<128x32xf32, #tpu.memory_space<vmem>>, vector<32x32xf32>
    tpu.vector_store %arg8[%c0_18, %c0_19], %35 {strides = array<i32>} : memref<128x32xf32, #tpu.memory_space<vmem>>, vector<32x32xf32>,
    %37 = vector.extract_strided_slice %27 {offsets = [32, 0], sizes = [32, 256], strides = [1, 1]} : vector<128x256xbf16> to vector<32x256xbf16>
    %38 = vector.extract_strided_slice %10 {offsets = [32, 0], sizes = [32, 256], strides = [1, 1]} : vector<128x256xbf16> to vector<32x256xbf16>
    %cst_20 = arith.constant dense<0.000000e+00> : vector<32x32xf32>
    %39 = tpu.matmul %37, %38, %cst_20 {dimension_numbers = #tpu.dot_dimension_numbers<[1], [1], [0], [0], [0, 0, 1, 0], [], []>} : vector<32x256xbf16>, vector<32x256xbf16>, vector<32x32xf32> -> vector<32x32xf32>
    %40 = vector.extract_strided_slice %16 {offsets = [32, 0], sizes = [32, 1], strides = [1, 1]} : vector<128x1xf32> to vector<32x1xf32>
    %c32 = arith.constant 32 : index
    %c0_21 = arith.constant 0 : index
    %41 = vector.load %arg8[%c32, %c0_21] : memref<128x32xf32, #tpu.memory_space<vmem>>, vector<32x32xf32>
    %42 = vector.broadcast %40 : vector<32x1xf32> to vector<32x32xf32>
    %43 = arith.mulf %42, %41 : vector<32x32xf32>
    %44 = arith.addf %43, %39 : vector<32x32xf32>
    %c32_22 = arith.constant 32 : index
    %c0_23 = arith.constant 0 : index
    %45 = vector.load %arg8[%c32_22, %c0_23] : memref<128x32xf32, #tpu.memory_space<vmem>>, vector<32x32xf32>
    tpu.vector_store %arg8[%c32_22, %c0_23], %44 {strides = array<i32>} : memref<128x32xf32, #tpu.memory_space<vmem>>, vector<32x32xf32>,
    %46 = vector.extract_strided_slice %27 {offsets = [64, 0], sizes = [32, 256], strides = [1, 1]} : vector<128x256xbf16> to vector<32x256xbf16>
    %47 = vector.extract_strided_slice %10 {offsets = [64, 0], sizes = [32, 256], strides = [1, 1]} : vector<128x256xbf16> to vector<32x256xbf16>
    %cst_24 = arith.constant dense<0.000000e+00> : vector<32x32xf32>
    %48 = tpu.matmul %46, %47, %cst_24 {dimension_numbers = #tpu.dot_dimension_numbers<[1], [1], [0], [0], [0, 0, 1, 0], [], []>} : vector<32x256xbf16>, vector<32x256xbf16>, vector<32x32xf32> -> vector<32x32xf32>
    %49 = vector.extract_strided_slice %16 {offsets = [64, 0], sizes = [32, 1], strides = [1, 1]} : vector<128x1xf32> to vector<32x1xf32>
    %c64 = arith.constant 64 : index
    %c0_25 = arith.constant 0 : index
    %50 = vector.load %arg8[%c64, %c0_25] : memref<128x32xf32, #tpu.memory_space<vmem>>, vector<32x32xf32>
    %51 = vector.broadcast %49 : vector<32x1xf32> to vector<32x32xf32>
    %52 = arith.mulf %51, %50 : vector<32x32xf32>
    %53 = arith.addf %52, %48 : vector<32x32xf32>
    %c64_26 = arith.constant 64 : index
    %c0_27 = arith.constant 0 : index
    %54 = vector.load %arg8[%c64_26, %c0_27] : memref<128x32xf32, #tpu.memory_space<vmem>>, vector<32x32xf32>
    tpu.vector_store %arg8[%c64_26, %c0_27], %53 {strides = array<i32>} : memref<128x32xf32, #tpu.memory_space<vmem>>, vector<32x32xf32>,
    %55 = vector.extract_strided_slice %27 {offsets = [96, 0], sizes = [32, 256], strides = [1, 1]} : vector<128x256xbf16> to vector<32x256xbf16>
    %56 = vector.extract_strided_slice %10 {offsets = [96, 0], sizes = [32, 256], strides = [1, 1]} : vector<128x256xbf16> to vector<32x256xbf16>
    %cst_28 = arith.constant dense<0.000000e+00> : vector<32x32xf32>
    %57 = tpu.matmul %55, %56, %cst_28 {dimension_numbers = #tpu.dot_dimension_numbers<[1], [1], [0], [0], [0, 0, 1, 0], [], []>} : vector<32x256xbf16>, vector<32x256xbf16>, vector<32x32xf32> -> vector<32x32xf32>
    %58 = vector.extract_strided_slice %16 {offsets = [96, 0], sizes = [32, 1], strides = [1, 1]} : vector<128x1xf32> to vector<32x1xf32>
    %c96 = arith.constant 96 : index
    %c0_29 = arith.constant 0 : index
    %59 = vector.load %arg8[%c96, %c0_29] : memref<128x32xf32, #tpu.memory_space<vmem>>, vector<32x32xf32>
    %60 = vector.broadcast %58 : vector<32x1xf32> to vector<32x32xf32>
    %61 = arith.mulf %60, %59 : vector<32x32xf32>
    %62 = arith.addf %61, %57 : vector<32x32xf32>
    %c96_30 = arith.constant 96 : index
    %c0_31 = arith.constant 0 : index
    %63 = vector.load %arg8[%c96_30, %c0_31] : memref<128x32xf32, #tpu.memory_space<vmem>>, vector<32x32xf32>
    tpu.vector_store %arg8[%c96_30, %c0_31], %62 {strides = array<i32>} : memref<128x32xf32, #tpu.memory_space<vmem>>, vector<32x32xf32>,
    %c0_i32_32 = arith.constant 0 : i32
    %64 = arith.cmpi eq, %arg1, %c0_i32_32 : i32
    %65 = arith.extui %64 : i1 to i32
    %c0_i32_33 = arith.constant 0 : i32
    %66 = arith.cmpi ne, %65, %c0_i32_33 : i32
    scf.if %66 {
      %c0_34 = arith.constant 0 : index
      %c0_35 = arith.constant 0 : index
      %67 = vector.load %arg7[%c0_34, %c0_35] : memref<128x1xf32, #tpu.memory_space<vmem>>, vector<128x1xf32>
      %68 = tpu.reciprocal %67 {approx = true} : vector<128x1xf32> -> vector<128x1xf32>
      %c0_36 = arith.constant 0 : index
      %c0_37 = arith.constant 0 : index
      %69 = vector.load %arg8[%c0_36, %c0_37] : memref<128x32xf32, #tpu.memory_space<vmem>>, vector<128x32xf32>
      %70 = vector.broadcast %68 : vector<128x1xf32> to vector<128x32xf32>
      %71 = arith.mulf %69, %70 : vector<128x32xf32>
      %72 = arith.truncf %71 : vector<128x32xf32> to vector<128x32xbf16>
      %c0_38 = arith.constant 0 : index
      %c0_39 = arith.constant 0 : index
      %c0_40 = arith.constant 0 : index
      %73 = vector.load %arg4[%c0_38, %c0_39, %c0_40] : memref<4x4x32xbf16, #tpu.memory_space<vmem>>, vector<1x4x32xbf16>
      %74 = vector.shape_cast %73 : vector<1x4x32xbf16> to vector<4x32xbf16>
      %75 = vector.extract_strided_slice %72 {offsets = [0, 0], sizes = [32, 32], strides = [1, 1]} : vector<128x32xbf16> to vector<32x32xbf16>
      %cst_41 = arith.constant dense<0.000000e+00> : vector<4x32xf32>
      %76 = tpu.matmul %74, %75, %cst_41 {dimension_numbers = #tpu.dot_dimension_numbers<[1], [1], [0], [0], [0, 0, 1, 0], [], []>} : vector<4x32xbf16>, vector<32x32xbf16>, vector<4x32xf32> -> vector<4x32xf32>
      %c0_42 = arith.constant 0 : index
      %c0_43 = arith.constant 0 : index
      %c0_44 = arith.constant 0 : index
      %c0_45 = arith.constant 0 : index
      %77 = vector.load %arg5[%c0_42, %c0_43, %c0_44, %c0_45] : memref<1x4x4x32xf32, #tpu.memory_space<vmem>>, vector<1x1x4x32xf32>
      %78 = vector.shape_cast %77 : vector<1x1x4x32xf32> to vector<4x32xf32>
      %79 = vector.shape_cast %76 : vector<4x32xf32> to vector<1x1x4x32xf32>
      tpu.vector_store %arg5[%c0_42, %c0_43, %c0_44, %c0_45], %79 {strides = array<i32>} : memref<1x4x4x32xf32, #tpu.memory_space<vmem>>, vector<1x1x4x32xf32>,
      %c1 = arith.constant 1 : index
      %c0_46 = arith.constant 0 : index
      %c0_47 = arith.constant 0 : index
      %80 = vector.load %arg4[%c1, %c0_46, %c0_47] : memref<4x4x32xbf16, #tpu.memory_space<vmem>>, vector<1x4x32xbf16>
      %81 = vector.shape_cast %80 : vector<1x4x32xbf16> to vector<4x32xbf16>
      %82 = vector.extract_strided_slice %72 {offsets = [32, 0], sizes = [32, 32], strides = [1, 1]} : vector<128x32xbf16> to vector<32x32xbf16>
      %cst_48 = arith.constant dense<0.000000e+00> : vector<4x32xf32>
      %83 = tpu.matmul %81, %82, %cst_48 {dimension_numbers = #tpu.dot_dimension_numbers<[1], [1], [0], [0], [0, 0, 1, 0], [], []>} : vector<4x32xbf16>, vector<32x32xbf16>, vector<4x32xf32> -> vector<4x32xf32>
      %c0_49 = arith.constant 0 : index
      %c1_50 = arith.constant 1 : index
      %c0_51 = arith.constant 0 : index
      %c0_52 = arith.constant 0 : index
      %84 = vector.load %arg5[%c0_49, %c1_50, %c0_51, %c0_52] : memref<1x4x4x32xf32, #tpu.memory_space<vmem>>, vector<1x1x4x32xf32>
      %85 = vector.shape_cast %84 : vector<1x1x4x32xf32> to vector<4x32xf32>
      %86 = vector.shape_cast %83 : vector<4x32xf32> to vector<1x1x4x32xf32>
      tpu.vector_store %arg5[%c0_49, %c1_50, %c0_51, %c0_52], %86 {strides = array<i32>} : memref<1x4x4x32xf32, #tpu.memory_space<vmem>>, vector<1x1x4x32xf32>,
      %c2 = arith.constant 2 : index
      %c0_53 = arith.constant 0 : index
      %c0_54 = arith.constant 0 : index
      %87 = vector.load %arg4[%c2, %c0_53, %c0_54] : memref<4x4x32xbf16, #tpu.memory_space<vmem>>, vector<1x4x32xbf16>
      %88 = vector.shape_cast %87 : vector<1x4x32xbf16> to vector<4x32xbf16>
      %89 = vector.extract_strided_slice %72 {offsets = [64, 0], sizes = [32, 32], strides = [1, 1]} : vector<128x32xbf16> to vector<32x32xbf16>
      %cst_55 = arith.constant dense<0.000000e+00> : vector<4x32xf32>
      %90 = tpu.matmul %88, %89, %cst_55 {dimension_numbers = #tpu.dot_dimension_numbers<[1], [1], [0], [0], [0, 0, 1, 0], [], []>} : vector<4x32xbf16>, vector<32x32xbf16>, vector<4x32xf32> -> vector<4x32xf32>
      %c0_56 = arith.constant 0 : index
      %c2_57 = arith.constant 2 : index
      %c0_58 = arith.constant 0 : index
      %c0_59 = arith.constant 0 : index
      %91 = vector.load %arg5[%c0_56, %c2_57, %c0_58, %c0_59] : memref<1x4x4x32xf32, #tpu.memory_space<vmem>>, vector<1x1x4x32xf32>
      %92 = vector.shape_cast %91 : vector<1x1x4x32xf32> to vector<4x32xf32>
      %93 = vector.shape_cast %90 : vector<4x32xf32> to vector<1x1x4x32xf32>
      tpu.vector_store %arg5[%c0_56, %c2_57, %c0_58, %c0_59], %93 {strides = array<i32>} : memref<1x4x4x32xf32, #tpu.memory_space<vmem>>, vector<1x1x4x32xf32>,
      %c3 = arith.constant 3 : index
      %c0_60 = arith.constant 0 : index
      %c0_61 = arith.constant 0 : index
      %94 = vector.load %arg4[%c3, %c0_60, %c0_61] : memref<4x4x32xbf16, #tpu.memory_space<vmem>>, vector<1x4x32xbf16>
      %95 = vector.shape_cast %94 : vector<1x4x32xbf16> to vector<4x32xbf16>
      %96 = vector.extract_strided_slice %72 {offsets = [96, 0], sizes = [32, 32], strides = [1, 1]} : vector<128x32xbf16> to vector<32x32xbf16>
      %cst_62 = arith.constant dense<0.000000e+00> : vector<4x32xf32>
      %97 = tpu.matmul %95, %96, %cst_62 {dimension_numbers = #tpu.dot_dimension_numbers<[1], [1], [0], [0], [0, 0, 1, 0], [], []>} : vector<4x32xbf16>, vector<32x32xbf16>, vector<4x32xf32> -> vector<4x32xf32>
      %c0_63 = arith.constant 0 : index
      %c3_64 = arith.constant 3 : index
      %c0_65 = arith.constant 0 : index
      %c0_66 = arith.constant 0 : index
      %98 = vector.load %arg5[%c0_63, %c3_64, %c0_65, %c0_66] : memref<1x4x4x32xf32, #tpu.memory_space<vmem>>, vector<1x1x4x32xf32>
      %99 = vector.shape_cast %98 : vector<1x1x4x32xf32> to vector<4x32xf32>
      %100 = vector.shape_cast %97 : vector<4x32xf32> to vector<1x1x4x32xf32>
      tpu.vector_store %arg5[%c0_63, %c3_64, %c0_65, %c0_66], %100 {strides = array<i32>} : memref<1x4x4x32xf32, #tpu.memory_space<vmem>>, vector<1x1x4x32xf32>,
    } else {
    }
    return
  }
  func.func @transform_0(%arg0: i32, %arg1: i32) -> (i32, i32, i32) {
    %c0_i32 = arith.constant 0 : i32
    %c0_i32_0 = arith.constant 0 : i32
    return %arg0, %c0_i32, %arg1 : i32, i32, i32
  }
  func.func @transform_1(%arg0: i32, %arg1: i32) -> (i32, i32) {
    %c0_i32 = arith.constant 0 : i32
    %c0_i32_0 = arith.constant 0 : i32
    %c0_i32_1 = arith.constant 0 : i32
    return %c0_i32, %c0_i32_0 : i32, i32
  }
  func.func @transform_2(%arg0: i32, %arg1: i32) -> (i32, i32, i32) {
    %c0_i32 = arith.constant 0 : i32
    %c0_i32_0 = arith.constant 0 : i32
    %c0_i32_1 = arith.constant 0 : i32
    %c0_i32_2 = arith.constant 0 : i32
    return %c0_i32, %c0_i32_0, %c0_i32_1 : i32, i32, i32
  }
  func.func @transform_3(%arg0: i32, %arg1: i32) -> (i32, i32, i32, i32) {
    %c0_i32 = arith.constant 0 : i32
    %c0_i32_0 = arith.constant 0 : i32
    %c0_i32_1 = arith.constant 0 : i32
    %c0_i32_2 = arith.constant 0 : i32
    return %arg0, %c0_i32, %c0_i32_0, %c0_i32_1 : i32, i32, i32, i32
  }
}

</mosaic_0001>

<bundles_post_ra>
// kernel: tpu_custom_call.1
= control target key start
LH: loop header
LB: loop body
LE: loop exit
PB: predicated region body
PF: predicated region fallthrough
CT: control target
= control target key end

     0   :  { %8 = vsyncpa [#allocation6], 0  ;;  %s3116_s0 = inlined_call_operand.vmem [shape: f32[2,4,256], index: 0, kind: input, shape index: {}]   ;;  %s3117_s1 = inlined_call_operand.vmem [shape: bf16[256,4], index: 1, kind: input, shape index: {}]   ;;  %s3118_s2 = inlined_call_operand.vmem [shape: bf16[4,4,32], index: 2, kind: input, shape index: {}]   ;;  %s3119_s3 = inlined_call_operand.hbm [shape: f32[2,4,4,32], index: 3, kind: output, shape index: {}]  }
   0x1   :  { %10 = vsyncpa [#allocation6 + $0x1], 0  ;;  %s2298_s12 = smov 0   ;;  %s2300_s13 = smov 0  }
   0x2   :  { %s2302_s14 = smov 0   ;;  %s2304_s15 = smov 0  }
   0x3   :  { %s2306_s16 = smov 0   ;;  %s2308_s17 = smov 0  }
   0x4 LB: > { %s1881_s18 = sadd.s32 4294967295, %s2269_s17   ;;  %s1882_s19 = sadd.s32 4294967294, %s2269_s17   ;;  %s2269_s17 = sphi %s2308_s17, %s16_s17   ;;  %s2265_s16 = sphi %s2306_s16, %s3261_s16   ;;  %s2261_s15 = sphi %s2304_s15, %s3260_s15   ;;  %s2257_s14 = sphi %s2302_s14, %s3259_s14   ;;  %s2253_s13 = sphi %s2300_s13, %s3258_s13   ;;  %s2249_s12 = sphi %s2298_s12, %s3257_s12  }
   0x5   : > { %s28_s20 = sadd.s32 1, %s2265_s16  ;;  %s105_s21 = sadd.s32 1, %s2257_s14 }
   0x6   : > { %p30_p0 = scmp.ge.s32.totalorder %s28_s20, 2  ;;  %p115_p1 = scmp.ne.s32.totalorder %s2257_s14, %s2253_s13 }
   0x7   : > { %p116_p2 = scmp.eq.s32.totalorder %s1881_s18, 1  ;;  %p121_p3 = scmp.ne.s32.totalorder %s2253_s13, %s2249_s12 }
   0x8   : > { %s3263_s20 = smov (%p30_p0, %s28_s20), 0  ;;  %p122_p5 = scmp.eq.s32.totalorder %s1882_s19, 1 }
   0x9   : > { %p2338_p4 = por %p116_p2, %p115_p1  ;;  %s102_s23 = ssub.s32 %s2265_s16, %s3263_s20 }
   0xa   : > { %p1885_p6 = scmp.ge.s32.totalorder %s2269_s17, 1  ;;  %p103_p7 = scmp.eq.s32.totalorder %s102_s23, 0 }
   0xb   : > { %p2345_p8 = por %p122_p5, %p121_p3  ;;  %p159_p9 = scmp.lt.s32.totalorder %s2269_s17, 3 }
   0xc   : > { %s2351_s25 = scalar_select %p103_p7, %s2257_s14, %s105_s21  }
   0xd   : > { %p160_p10 = pnand %p1885_p6, %p159_p9 }
   0xf   : > { %163 = sbr.rel (%p160_p10) target bundleno = 1176 (0x498), region = 32 }
  0x16   : > { %p188_p11 = scmp.lt.s32.totalorder %s2261_s15, 1  ;;  %v2271_v0 = vmov 0   ;;  %vm419_vm0 = vcmask 1041408   ;;  %v2047_v6 = vld [vmem:[%s3117_s1] sm:$0xff]   ;;  %vm370_vm1 = vcmask 31744   ;;  %v2048_v7 = vld [vmem:[%s3117_s1 + $0x8] sm:$0xff]  }
  0x17   : > { %458 = vmatprep.mubr.bf16.mxu0 %v2271_v0  ;;  %2044 = vset.pattern.permute.xlu0 %v2271_v0  ;;  %v2049_v8 = vld [vmem:[%s3117_s1 + $0x10] sm:$0xff]   ;;  %v2050_v9 = vld [vmem:[%s3117_s1 + $0x18] sm:$0xff]   ;;  %v2051_v10 = vld [vmem:[%s3117_s1 + $0x20] sm:$0xff]   ;;  %vm202_vm2 = vcmask 7168   ;;  %v2272_v15 = vmov -inf   ;;  %v3120_v47 = vmov 0.0  }
  0x18   : > { %s189_s26 = scalar_select %p188_p11, %s2261_s15, 1  ;;  %2045 = vset.pattern.permute.xlu1 %v2271_v0  ;;  %v2052_v11 = vld [vmem:[%s3117_s1 + $0x28] sm:$0xff]   ;;  %v2053_v12 = vld [vmem:[%s3117_s1 + $0x30] sm:$0xff]   ;;  %v2054_v13 = vld [vmem:[%s3117_s1 + $0x38] sm:$0xff]   ;;  %203 = vst.msk [vmem:[#allocation2] sm:$0xff] %vm202_vm2, %v2272_v15  ;;  %vm235_vm3 = vcmask 261120  }
  0x19   : > { %v2055_v14 = vld [vmem:[%s3117_s1 + $0x40] sm:$0xff]   ;;  %204 = vst.msk [vmem:[#allocation2 + $0x8] sm:$0xff] %vm202_vm2, %v2272_v15  ;;  %205 = vst.msk [vmem:[#allocation2 + $0x10] sm:$0xff] %vm202_vm2, %v2272_v15  ;;  %v2056_v16 = vld [vmem:[%s3117_s1 + $0x48] sm:$0xff]   ;;  %vm2274_vm4 = vmmov 0   ;;  %s184_s10 = sand.u32 1, %s2253_s13  }
  0x1a   : > { %s1937_s27 = sshll.u32 %s189_s26, 3  ;;  %206 = vst.msk [vmem:[#allocation2 + $0x18] sm:$0xff] %vm202_vm2, %v2272_v15  ;;  %207 = vst.msk [vmem:[#allocation2 + $0x20] sm:$0xff] %vm202_vm2, %v2272_v15  ;;  %v2057_v17 = vld [vmem:[%s3117_s1 + $0x50] sm:$0xff]   ;;  %v2058_v18 = vld [vmem:[%s3117_s1 + $0x58] sm:$0xff]   ;;  %s1886_s11 = sshll.u32 %s184_s10, 4 }
  0x1b   : > { %s195_s30 = scalar_lea.vmem %s3116_s0, %s1937_s27  ;;  %208 = vst.msk [vmem:[#allocation2 + $0x28] sm:$0xff] %vm202_vm2, %v2272_v15  ;;  %209 = vst.msk [vmem:[#allocation2 + $0x30] sm:$0xff] %vm202_vm2, %v2272_v15  ;;  %v2059_v19 = vld [vmem:[%s3117_s1 + $0x60] sm:$0xff]   ;;  %v2060_v20 = vld [vmem:[%s3117_s1 + $0x68] sm:$0xff]   ;;  %vm1630_vm5 = vcmask 257024   ;;  %s186_s18 = scalar_lea.vmem [#allocation5], %s1886_s11 }
  0x1c   : > { %v252_v1 = vld [vmem:[%s195_s30] sm:$0xff]  ;;  %210 = vst.msk [vmem:[#allocation2 + $0x38] sm:$0xff] %vm202_vm2, %v2272_v15  ;;  %211 = vst.msk [vmem:[#allocation2 + $0x40] sm:$0xff] %vm202_vm2, %v2272_v15  ;;  %v2061_v21 = vld [vmem:[%s3117_s1 + $0x70] sm:$0xff]   ;;  %s1805_s19 = sshll.u32 %s186_s18, 4  ;;  %s1938_s21 = sshll.u32 %s2261_s15, 8  ;;  %s3062_s19 = int_to_ptr.vmem [resolvable:$true] %s1805_s19 }
  0x1d   : > { %v254_v2 = vcombine.high %v252_v1, %v252_v1  ;;  %v256_v3 = vpack.c.bf16 %v252_v1, %v252_v1  ;;  %212 = vst.msk [vmem:[#allocation2 + $0x48] sm:$0xff] %vm202_vm2, %v2272_v15  ;;  %213 = vst.msk [vmem:[#allocation2 + $0x50] sm:$0xff] %vm202_vm2, %v2272_v15  ;;  %v2062_v22 = vld [vmem:[%s3117_s1 + $0x78] sm:$0xff]   ;;  %s3067_s27 = scalar_lea.hbm %s3119_s3, %s1938_s21  ;;  %s3070_s28 = scalar_lea.sflag [#allocation6], %s184_s10 }
  0x1e   : > { %214 = vst.msk [vmem:[#allocation2 + $0x58] sm:$0xff] %vm202_vm2, %v2272_v15  ;;  %215 = vst.msk [vmem:[#allocation2 + $0x60] sm:$0xff] %vm202_vm2, %v2272_v15  ;;  %s2191_s29 = scalar_lea.vmem %s3062_s19, 256  ;;  %s2275_s15 = smov [#allocation5]  }
  0x1f   : > { %v257_v4 = vpack.c.bf16 %v254_v2, %v254_v2  ;;  %v421_v5 = vsel %vm419_vm0, %v256_v3, 0  ;;  %216 = vst.msk [vmem:[#allocation2 + $0x68] sm:$0xff] %vm202_vm2, %v2272_v15  ;;  %217 = vst.msk [vmem:[#allocation2 + $0x70] sm:$0xff] %vm202_vm2, %v2272_v15  ;;  %p2192_p12 = scmp.ne.s32.totalorder %s3062_s19, %s2191_s29  ;;  %s2195_s30 = sshll.u32 %s2275_s15, 4  ;;  %s2196_s30 = int_to_ptr.vmem [resolvable:$false] %s2195_s30 }
  0x20   : > { %218 = vst.msk [vmem:[#allocation2 + $0x78] sm:$0xff] %vm202_vm2, %v2272_v15  ;;  %219 = vst.msk [vmem:[#allocation3] sm:$0xff] %vm202_vm2, %v3120_v47  ;;  %s2197_s4 = scalar_lea.vmem %s2196_s30, 512  ;;  %p2198_p1 = scmp.lt.s32.totalorder %s3062_s19, %s2196_s30 }
  0x21   : > { %1905 = vmatprep.subr.msk.bf16.mxu0 %vm419_vm0, %v257_v4  ;;  %220 = vst.msk [vmem:[#allocation3 + $0x8] sm:$0xff] %vm202_vm2, %v3120_v47  ;;  %221 = vst.msk [vmem:[#allocation3 + $0x10] sm:$0xff] %vm202_vm2, %v3120_v47  ;;  %p2193_p13 = pnand %p2192_p12, %p2338_p4  ;;  %p2199_p2 = scmp.lt.s32.totalorder %s2197_s4, %s2191_s29 }
  0x22   : > { %427 = vmatpush1.bf16.msra.mxu0 %v421_v5  ;;  %222 = vst.msk [vmem:[#allocation3 + $0x18] sm:$0xff] %vm202_vm2, %v3120_v47  ;;  %223 = vst.msk [vmem:[#allocation3 + $0x20] sm:$0xff] %vm202_vm2, %v3120_v47 }
  0x23   : > { %224 = vst.msk [vmem:[#allocation3 + $0x28] sm:$0xff] %vm202_vm2, %v3120_v47  ;;  %225 = vst.msk [vmem:[#allocation3 + $0x30] sm:$0xff] %vm202_vm2, %v3120_v47  ;;  %p2194_p0 = pneg %p2193_p13  ;;  %p2200_p3 = por %p2199_p2, %p2198_p1 }
  0x24   : > { %226 = vst.msk [vmem:[#allocation3 + $0x38] sm:$0xff] %vm202_vm2, %v3120_v47  ;;  %227 = vst.msk [vmem:[#allocation3 + $0x40] sm:$0xff] %vm202_vm2, %v3120_v47 }
  0x25   : > { %1906 = vmatmul.mubr.msk.bf16.vlgmr.msra.gmra.mrb[0].mxu0 %vm370_vm1, %v2047_v6  ;;  %228 = vst.msk [vmem:[#allocation3 + $0x48] sm:$0xff] %vm202_vm2, %v3120_v47  ;;  %229 = vst.msk [vmem:[#allocation3 + $0x50] sm:$0xff] %vm202_vm2, %v3120_v47  ;;  %p2201_p5 = pnand %p2200_p3, %p2194_p0 }
  0x26   : > { %468 = vmatprep.mubr.bf16.mxu0 %v2271_v0  ;;  %230 = vst.msk [vmem:[#allocation3 + $0x58] sm:$0xff] %vm202_vm2, %v3120_v47  ;;  %231 = vst.msk [vmem:[#allocation3 + $0x60] sm:$0xff] %vm202_vm2, %v3120_v47 }
  0x27   : > { %232 = vst.msk [vmem:[#allocation3 + $0x68] sm:$0xff] %vm202_vm2, %v3120_v47  ;;  %233 = vst.msk [vmem:[#allocation3 + $0x70] sm:$0xff] %vm202_vm2, %v3120_v47 }
  0x28   : > { %234 = vst.msk [vmem:[#allocation3 + $0x78] sm:$0xff] %vm202_vm2, %v3120_v47 }
  0x2d   : > { %1907 = vmatmul.mubr.msk.bf16.gmra.mrb[4].mxu0 %vm370_vm1, %v2048_v7 }
  0x2e   : > { %478 = vmatprep.mubr.bf16.mxu0 %v2271_v0 }
  0x35   : > { %1908 = vmatmul.mubr.msk.bf16.gmra.mrb[8].mxu0 %vm370_vm1, %v2049_v8  ;;  %v2584_v8 = vld [vmem:[#allocation2] sm:$0xff] }
  0x36   : > { %488 = vmatprep.mubr.bf16.mxu0 %v2271_v0  ;;  %3161 = vst [vmem:[#allocation10_spill] sm:$0xff] %v2584_v8 }
  0x3d   : > { %1909 = vmatmul.mubr.msk.bf16.gmra.mrb[12].mxu0 %vm370_vm1, %v2050_v9 }
  0x3e   : > { %498 = vmatprep.mubr.bf16.mxu0 %v2271_v0 }
  0x45   : > { %1910 = vmatmul.mubr.msk.bf16.gmra.mrb[16].mxu0 %vm370_vm1, %v2051_v10 }
  0x46   : > { %508 = vmatprep.mubr.bf16.mxu0 %v2271_v0 }
  0x4d   : > { %1911 = vmatmul.mubr.msk.bf16.gmra.mrb[20].mxu0 %vm370_vm1, %v2052_v11  ;;  %v2589_v11 = vld [vmem:[#allocation2 + $0x8] sm:$0xff] }
  0x4e   : > { %518 = vmatprep.mubr.bf16.mxu0 %v2271_v0  ;;  %3163 = vst [vmem:[#allocation12_spill] sm:$0xff] %v2589_v11 }
  0x55   : > { %1912 = vmatmul.mubr.msk.bf16.gmra.mrb[24].mxu0 %vm370_vm1, %v2053_v12 }
  0x56   : > { %528 = vmatprep.mubr.bf16.mxu0 %v2271_v0 }
  0x5d   : > { %1913 = vmatmul.mubr.msk.bf16.gmra.mrb[28].mxu0 %vm370_vm1, %v2054_v13 }
  0x5e   : > { %538 = vmatprep.mubr.bf16.mxu0 %v2271_v0 }
  0x65   : > { %1914 = vmatmul.mubr.msk.bf16.gmra.mrb[32].mxu0 %vm370_vm1, %v2055_v14 }
  0x66   : > { %548 = vmatprep.mubr.bf16.mxu0 %v2271_v0 }
  0x6d   : > { %1915 = vmatmul.mubr.msk.bf16.gmra.mrb[36].mxu0 %vm370_vm1, %v2056_v16 }
  0x6e   : > { %558 = vmatprep.mubr.bf16.mxu0 %v2271_v0 }
  0x75   : > { %1916 = vmatmul.mubr.msk.bf16.gmra.mrb[40].mxu0 %vm370_vm1, %v2057_v17  ;;  %v2599_v17 = vld [vmem:[#allocation2 + $0x10] sm:$0xff] }
  0x76   : > { %568 = vmatprep.mubr.bf16.mxu0 %v2271_v0  ;;  %3165 = vst [vmem:[#allocation14_spill] sm:$0xff] %v2599_v17 }
  0x7d   : > { %1917 = vmatmul.mubr.msk.bf16.gmra.mrb[44].mxu0 %vm370_vm1, %v2058_v18 }
  0x7e   : > { %578 = vmatprep.mubr.bf16.mxu0 %v2271_v0 }
  0x85   : > { %1918 = vmatmul.mubr.msk.bf16.gmra.mrb[48].mxu0 %vm370_vm1, %v2059_v19 }
  0x86   : > { %588 = vmatprep.mubr.bf16.mxu0 %v2271_v0 }
  0x8d   : > { %1919 = vmatmul.mubr.msk.bf16.gmra.mrb[52].mxu0 %vm370_vm1, %v2060_v20 }
  0x8e   : > { %598 = vmatprep.mubr.bf16.mxu0 %v2271_v0 }
  0x95   : > { %1920 = vmatmul.mubr.msk.bf16.gmra.mrb[56].mxu0 %vm370_vm1, %v2061_v21 }
  0x96   : > { %608 = vmatprep.mubr.bf16.mxu0 %v2271_v0 }
  0x9d   : > { %1921 = vmatmul.mubr.msk.bf16.gmra.mrb[60].mxu0 %vm370_vm1, %v2062_v22 }
  0xf8   : > { %v2456_v23 = vpop.f32.mrb[0].mxu0 }
  0xf9   : > { %v2458_v24 = vpop.f32.mrb[1].mxu0 }
  0xfa   : > { %v2460_v25 = vpop.f32.mrb[2].mxu0  ;;  %v651_v26 = vmax.f32 %v2456_v23, %v2458_v24 }
  0xfb   : > { %v2464_v27 = vpop.f32.mrb[3].mxu0 }
  0xfc   : > { %652 = vmax.xlane.f32.xlu0 %v651_v26  ;;  %v654_v28 = vmax.f32 %v2460_v25, %v2464_v27 }
 0x100   : > { %655 = vmax.xlane.f32.xlu0 %v654_v28  ;;  %v2468_v29 = vpop.f32.mrb[4].mxu0 }
 0x101   : > { %v2470_v30 = vpop.f32.mrb[5].mxu0 }
 0x102   : > { %v2472_v31 = vpop.f32.mrb[6].mxu0  ;;  %v657_v32 = vmax.f32 %v2468_v29, %v2470_v30 }
 0x103   : > { %v2476_v33 = vpop.f32.mrb[7].mxu0 }
 0x104   : > { %658 = vmax.xlane.f32.xlu1 %v657_v32  ;;  %v660_v34 = vmax.f32 %v2472_v31, %v2476_v33  ;;  %v2609_v32 = vld [vmem:[#allocation2 + $0x18] sm:$0xff] }
 0x105   : > { %3167 = vst [vmem:[#allocation16_spill] sm:$0xff] %v2609_v32 }
 0x108   : > { %661 = vmax.xlane.f32.xlu1 %v660_v34  ;;  %v2480_v35 = vpop.f32.mrb[8].mxu0 }
 0x109   : > { %v2482_v36 = vpop.f32.mrb[9].mxu0 }
 0x10a   : > { %v2484_v37 = vpop.f32.mrb[10].mxu0  ;;  %v663_v38 = vmax.f32 %v2480_v35, %v2482_v36 }
 0x10b   : > { %v2488_v39 = vpop.f32.mrb[11].mxu0 }
 0x10c   : > { %664 = vmax.xlane.f32.xlu0 %v663_v38  ;;  %v666_v40 = vmax.f32 %v2484_v37, %v2488_v39 }
 0x10e   : > { %667 = vmax.xlane.f32.xlu1 %v666_v40 }
 0x110   : > { %v2492_v41 = vpop.f32.mrb[12].mxu0 }
 0x111   : > { %v2494_v42 = vpop.f32.mrb[13].mxu0 }
 0x112   : > { %v2496_v43 = vpop.f32.mrb[14].mxu0  ;;  %v669_v44 = vmax.f32 %v2492_v41, %v2494_v42 }
 0x113   : > { %v2500_v45 = vpop.f32.mrb[15].mxu0 }
 0x114   : > { %670 = vmax.xlane.f32.xlu0 %v669_v44  ;;  %v672_v46 = vmax.f32 %v2496_v43, %v2500_v45 }
 0x116   : > { %673 = vmax.xlane.f32.xlu1 %v672_v46 }
 0x118   : > { %v2536_v48 = vpop.f32.mrb[16].mxu0 }
 0x119   : > { %v2538_v49 = vpop.f32.mrb[17].mxu0 }
 0x11a   : > { %v2540_v50 = vpop.f32.mrb[18].mxu0  ;;  %v675_v51 = vmax.f32 %v2536_v48, %v2538_v49 }
 0x11b   : > { %v2544_v52 = vpop.f32.mrb[19].mxu0 }
 0x11c   : > { %676 = vmax.xlane.f32.xlu0 %v675_v51  ;;  %v678_v53 = vmax.f32 %v2540_v50, %v2544_v52  ;;  %v2619_v51 = vld [vmem:[#allocation2 + $0x20] sm:$0xff] }
 0x11d   : > { %3169 = vst [vmem:[#allocation18_spill] sm:$0xff] %v2619_v51 }
 0x11e   : > { %679 = vmax.xlane.f32.xlu1 %v678_v53 }
 0x120   : > { %v2548_v54 = vpop.f32.mrb[20].mxu0 }
 0x121   : > { %v2550_v55 = vpop.f32.mrb[21].mxu0 }
 0x122   : > { %v2552_v56 = vpop.f32.mrb[22].mxu0  ;;  %v681_v57 = vmax.f32 %v2548_v54, %v2550_v55 }
 0x123   : > { %v2556_v58 = vpop.f32.mrb[23].mxu0 }
 0x124   : > { %682 = vmax.xlane.f32.xlu0 %v681_v57  ;;  %v684_v59 = vmax.f32 %v2552_v56, %v2556_v58  ;;  %v2704_v57 = vld [vmem:[#allocation2 + $0x50] sm:$0xff] }
 0x125   : > { %3181 = vst [vmem:[#allocation30_spill] sm:$0xff] %v2704_v57 }
 0x126   : > { %685 = vmax.xlane.f32.xlu1 %v684_v59 }
 0x128   : > { %v2560_v60 = vpop.f32.mrb[24].mxu0 }
 0x129   : > { %v2562_v61 = vpop.f32.mrb[25].mxu0 }
 0x12a   : > { %v2564_v62 = vpop.f32.mrb[26].mxu0  ;;  %v687_v63 = vmax.f32 %v2560_v60, %v2562_v61 }
 0x12b   : > { %v2568_v0 = vpop.f32.mrb[27].mxu0 }
 0x12c   : > { %688 = vmax.xlane.f32.xlu0 %v687_v63  ;;  %v690_v1 = vmax.f32 %v2564_v62, %v2568_v0 }
 0x12e   : > { %691 = vmax.xlane.f32.xlu1 %v690_v1  ;;  %v2626_v1 = vld [vmem:[#allocation2 + $0x28] sm:$0xff] }
 0x12f   : > { %3170 = vst [vmem:[#allocation19_spill] sm:$0xff] %v2626_v1 }
 0x130   : > { %v2572_v2 = vpop.f32.mrb[28].mxu0 }
 0x131   : > { %v2574_v3 = vpop.f32.mrb[29].mxu0 }
 0x132   : > { %v2576_v4 = vpop.f32.mrb[30].mxu0  ;;  %v693_v5 = vmax.f32 %v2572_v2, %v2574_v3 }
 0x133   : > { %3159 = vst [vmem:[#allocation8_spill] sm:$0xff] %v2576_v4  ;;  %v2580_v6 = vpop.f32.mrb[31].mxu0 }
 0x134   : > { %3160 = vst [vmem:[#allocation9_spill] sm:$0xff] %v2580_v6  ;;  %694 = vmax.xlane.f32.xlu0 %v693_v5  ;;  %v696_v7 = vmax.f32 %v2576_v4, %v2580_v6 }
 0x136   : > { %697 = vmax.xlane.f32.xlu1 %v696_v7 }
 0x138   : > { %v540_v14 = vpop.f32.mrb[32].mxu0 }
 0x139   : > { %v542_v16 = vpop.f32.mrb[33].mxu0 }
 0x13a   : > { %v544_v18 = vpop.f32.mrb[34].mxu0 }
 0x13b   : > { %v546_v20 = vpop.f32.mrb[35].mxu0  ;;  %v619_v22 = vpack.c.bf16 %v544_v18, %v540_v14 }
 0x13c   : > { %v620_v26 = vpack.c.bf16 %v546_v20, %v542_v16 }
 0x13e   : > { %1084 = vmatprep.subr.bf16.mxu1 %v620_v26 }
 0x13f   : > { %1085 = vmatpush1.bf16.xpose.msra.mxu1 %v619_v22  ;;  %v2645_v22 = vld [vmem:[#allocation2 + $0x30] sm:$0xff] }
 0x140   : > { %v550_v40 = vpop.f32.mrb[36].mxu0  ;;  %3173 = vst [vmem:[#allocation22_spill] sm:$0xff] %v2645_v22 }
 0x141   : > { %v552_v46 = vpop.f32.mrb[37].mxu0 }
 0x142   : > { %v554_v53 = vpop.f32.mrb[38].mxu0 }
 0x143   : > { %v556_v59 = vpop.f32.mrb[39].mxu0  ;;  %v621_v5 = vpack.c.bf16 %v554_v53, %v550_v40 }
 0x144   : > { %v622_v7 = vpack.c.bf16 %v556_v59, %v552_v46  ;;  %v2650_v46 = vld [vmem:[#allocation2 + $0x38] sm:$0xff] }
 0x145   : > { %3174 = vst [vmem:[#allocation23_spill] sm:$0xff] %v2650_v46 }
 0x146   : > { %1086 = vmatprep.subr.bf16.mxu1 %v622_v7  ;;  %v2678_v7 = vld [vmem:[#allocation2 + $0x48] sm:$0xff] }
 0x147   : > { %1087 = vmatpush1.bf16.xpose.msra.mxu1 %v621_v5  ;;  %3178 = vst [vmem:[#allocation27_spill] sm:$0xff] %v2678_v7 }
 0x148   : > { %v2639_v18 = vpop.f32.mrb[40].mxu0 }
 0x189   : > { %v653_v9 = vpop.xlane.xlu0 %652 }
 0x18a   : > { %v2587_v10 = vmax.f32 %v2584_v8, %v653_v9 }
 0x18c   : > { %3162 = vst [vmem:[#allocation11_spill] sm:$0xff] %v2587_v10  ;;  %1052 = vst.msk [vmem:[#allocation2] sm:$0xff] %vm202_vm2, %v2587_v10  ;;  %765 = vperm.xlu0 %2044, %v2587_v10  }
 0x18d   : > { %v656_v13 = vpop.xlane.xlu0 %655 }
 0x18e   : > { %v2597_v15 = vmax.f32 %v2589_v11, %v656_v13 }
 0x190   : > { %3164 = vst [vmem:[#allocation13_spill] sm:$0xff] %v2597_v15  ;;  %1053 = vst.msk [vmem:[#allocation2 + $0x8] sm:$0xff] %vm202_vm2, %v2597_v15  ;;  %770 = vperm.xlu1 %2045, %v2597_v15  }
 0x191   : > { %v659_v21 = vpop.xlane.xlu1 %658 }
 0x192   : > { %v2607_v28 = vmax.f32 %v2599_v17, %v659_v21  ;;  %v562_v21 = vpop.f32.mrb[41].mxu0 }
 0x193   : > { %v2647_v26 = vpop.f32.mrb[42].mxu0 }
 0x194   : > { %3166 = vst [vmem:[#allocation15_spill] sm:$0xff] %v2607_v28  ;;  %1054 = vst.msk [vmem:[#allocation2 + $0x10] sm:$0xff] %vm202_vm2, %v2607_v28  ;;  %775 = vperm.xlu1 %2045, %v2607_v28  }
 0x195   : > { %v662_v38 = vpop.xlane.xlu1 %661 }
 0x196   : > { %v2617_v44 = vmax.f32 %v2609_v32, %v662_v38  ;;  %v566_v38 = vpop.f32.mrb[43].mxu0 }
 0x197   : > { %v624_v59 = vpack.c.bf16 %v566_v38, %v562_v21  ;;  %v2669_v21 = vpop.f32.mrb[44].mxu0  ;;  %v2671_v38 = vld [vmem:[#allocation2 + $0x40] sm:$0xff] }
 0x198   : > { %3168 = vst [vmem:[#allocation17_spill] sm:$0xff] %v2617_v44  ;;  %1055 = vst.msk [vmem:[#allocation2 + $0x18] sm:$0xff] %vm202_vm2, %v2617_v44  ;;  %780 = vperm.xlu1 %2045, %v2617_v44  }
 0x199   : > { %v665_v63 = vpop.xlane.xlu0 %664  ;;  %1170 = vmatprep.subr.bf16.mxu1 %v624_v59  ;;  %3177 = vst [vmem:[#allocation26_spill] sm:$0xff] %v2671_v38 }
 0x19a   : > { %v2629_v9 = vmax.f32 %v2619_v51, %v665_v63  ;;  %v2774_v51 = vld [vmem:[#allocation2 + $0x78] sm:$0xff] }
 0x19b   : > { %v668_v13 = vpop.xlane.xlu1 %667  ;;  %3190 = vst [vmem:[#allocation39_spill] sm:$0xff] %v2774_v51 }
 0x19c   : > { %3171 = vst [vmem:[#allocation20_spill] sm:$0xff] %v2629_v9  ;;  %1056 = vst.msk [vmem:[#allocation2 + $0x20] sm:$0xff] %vm202_vm2, %v2629_v9  ;;  %v2636_v16 = vmax.f32 %v2626_v1, %v668_v13  ;;  %785 = vperm.xlu1 %2045, %v2629_v9  }
 0x19e   : > { %3172 = vst [vmem:[#allocation21_spill] sm:$0xff] %v2636_v16  ;;  %1057 = vst.msk [vmem:[#allocation2 + $0x28] sm:$0xff] %vm202_vm2, %v2636_v16 }
 0x1a0   : > { %790 = vperm.xlu1 %2045, %v2636_v16  }
 0x1a1   : > { %v671_v40 = vpop.xlane.xlu0 %670 }
 0x1a2   : > { %v2655_v63 = vmax.f32 %v2645_v22, %v671_v40  ;;  %v2673_v40 = vpop.f32.mrb[45].mxu0  ;;  %v2742_v22 = vld [vmem:[#allocation2 + $0x68] sm:$0xff] }
 0x1a3   : > { %v674_v5 = vpop.xlane.xlu1 %673  ;;  %v2676_v59 = vpop.f32.mrb[46].mxu0  ;;  %3186 = vst [vmem:[#allocation35_spill] sm:$0xff] %v2742_v22 }
 0x1a4   : > { %3175 = vst [vmem:[#allocation24_spill] sm:$0xff] %v2655_v63  ;;  %1058 = vst.msk [vmem:[#allocation2 + $0x30] sm:$0xff] %vm202_vm2, %v2655_v63  ;;  %v2662_v13 = vmax.f32 %v2650_v46, %v674_v5  ;;  %795 = vperm.xlu1 %2045, %v2655_v63   ;;  %v2682_v20 = vpop.f32.mrb[47].mxu0 }
 0x1a6   : > { %3176 = vst [vmem:[#allocation25_spill] sm:$0xff] %v2662_v13  ;;  %1059 = vst.msk [vmem:[#allocation2 + $0x38] sm:$0xff] %vm202_vm2, %v2662_v13 }
 0x1a8   : > { %800 = vperm.xlu1 %2045, %v2662_v13  }
 0x1a9   : > { %v677_v5 = vpop.xlane.xlu0 %676 }
 0x1aa   : > { %v2685_v34 = vmax.f32 %v2671_v38, %v677_v5  ;;  %v2702_v5 = vpop.f32.mrb[48].mxu0  ;;  %v2710_v38 = vld [vmem:[#allocation2 + $0x58] sm:$0xff] }
 0x1ab   : > { %v680_v12 = vpop.xlane.xlu1 %679  ;;  %v2706_v19 = vpop.f32.mrb[49].mxu0  ;;  %3182 = vst [vmem:[#allocation31_spill] sm:$0xff] %v2710_v38 }
 0x1ac   : > { %3179 = vst [vmem:[#allocation28_spill] sm:$0xff] %v2685_v34  ;;  %1060 = vst.msk [vmem:[#allocation2 + $0x40] sm:$0xff] %vm202_vm2, %v2685_v34  ;;  %v2694_v47 = vmax.f32 %v2678_v7, %v680_v12  ;;  %805 = vperm.xlu1 %2045, %v2685_v34   ;;  %v2708_v53 = vpop.f32.mrb[50].mxu0  ;;  %v2736_v7 = vld [vmem:[#allocation2 + $0x60] sm:$0xff] }
 0x1ad   : > { %v2712_v34 = vpop.f32.mrb[51].mxu0  ;;  %3185 = vst [vmem:[#allocation34_spill] sm:$0xff] %v2736_v7 }
 0x1ae   : > { %3180 = vst [vmem:[#allocation29_spill] sm:$0xff] %v2694_v47  ;;  %1061 = vst.msk [vmem:[#allocation2 + $0x48] sm:$0xff] %vm202_vm2, %v2694_v47  ;;  %810 = vperm.xlu0 %2044, %v2694_v47   ;;  %v2734_v13 = vpop.f32.mrb[52].mxu0 }
 0x1af   : > { %v2738_v46 = vpop.f32.mrb[53].mxu0 }
 0x1b1   : > { %v683_v12 = vpop.xlane.xlu0 %682 }
 0x1b2   : > { %v2715_v14 = vmax.f32 %v2704_v57, %v683_v12  ;;  %v2740_v57 = vpop.f32.mrb[54].mxu0 }
 0x1b3   : > { %v686_v47 = vpop.xlane.xlu1 %685 }
 0x1b4   : > { %3183 = vst [vmem:[#allocation32_spill] sm:$0xff] %v2715_v14  ;;  %1062 = vst.msk [vmem:[#allocation2 + $0x50] sm:$0xff] %vm202_vm2, %v2715_v14  ;;  %v2726_v63 = vmax.f32 %v2710_v38, %v686_v47  ;;  %815 = vperm.xlu1 %2045, %v2715_v14   ;;  %v2744_v14 = vpop.f32.mrb[55].mxu0  ;;  %v2768_v38 = vld [vmem:[#allocation2 + $0x70] sm:$0xff] }
 0x1b5   : > { %v2766_v16 = vpop.f32.mrb[56].mxu0  ;;  %3189 = vst [vmem:[#allocation38_spill] sm:$0xff] %v2768_v38 }
 0x1b6   : > { %3184 = vst [vmem:[#allocation33_spill] sm:$0xff] %v2726_v63  ;;  %1063 = vst.msk [vmem:[#allocation2 + $0x58] sm:$0xff] %vm202_vm2, %v2726_v63  ;;  %820 = vperm.xlu0 %2044, %v2726_v63   ;;  %v2770_v1 = vpop.f32.mrb[57].mxu0 }
 0x1b9   : > { %v689_v47 = vpop.xlane.xlu0 %688 }
 0x1ba   : > { %v2747_v12 = vmax.f32 %v2736_v7, %v689_v47  ;;  %v2772_v7 = vpop.f32.mrb[58].mxu0 }
 0x1bb   : > { %v692_v63 = vpop.xlane.xlu1 %691 }
 0x1bc   : > { %3187 = vst [vmem:[#allocation36_spill] sm:$0xff] %v2747_v12  ;;  %1064 = vst.msk [vmem:[#allocation2 + $0x60] sm:$0xff] %vm202_vm2, %v2747_v12  ;;  %v2758_v9 = vmax.f32 %v2742_v22, %v692_v63  ;;  %825 = vperm.xlu1 %2045, %v2747_v12   ;;  %v2776_v12 = vpop.f32.mrb[59].mxu0 }
 0x1bd   : > { %v2798_v28 = vpop.f32.mrb[60].mxu0 }
 0x1be   : > { %3188 = vst [vmem:[#allocation37_spill] sm:$0xff] %v2758_v9  ;;  %1065 = vst.msk [vmem:[#allocation2 + $0x68] sm:$0xff] %vm202_vm2, %v2758_v9  ;;  %830 = vperm.xlu0 %2044, %v2758_v9   ;;  %v2800_v22 = vpop.f32.mrb[61].mxu0 }
 0x1bf   : > { %3193 = vst [vmem:[#allocation42_spill] sm:$0xff] %v2798_v28  ;;  %v2802_v17 = vpop.f32.mrb[62].mxu0 }
 0x1c1   : > { %v695_v63 = vpop.xlane.xlu0 %694 }
 0x1c2   : > { %v2779_v47 = vmax.f32 %v2768_v38, %v695_v63  ;;  %v2804_v38 = vpop.f32.mrb[63].mxu0 }
 0x1c3   : > { %v698_v9 = vpop.xlane.xlu1 %697 }
 0x1c4   : > { %3191 = vst [vmem:[#allocation40_spill] sm:$0xff] %v2779_v47  ;;  %1066 = vst.msk [vmem:[#allocation2 + $0x70] sm:$0xff] %vm202_vm2, %v2779_v47  ;;  %v2790_v44 = vmax.f32 %v2774_v51, %v698_v9  ;;  %835 = vperm.xlu1 %2045, %v2779_v47  }
 0x1c6   : > { %3192 = vst [vmem:[#allocation41_spill] sm:$0xff] %v2790_v44  ;;  %1067 = vst.msk [vmem:[#allocation2 + $0x78] sm:$0xff] %vm202_vm2, %v2790_v44  ;;  %840 = vperm.xlu0 %2044, %v2790_v44  }
 0x20b   : > { %v766_v63 = vpop.permute.xlu0 %765 }
 0x20c   : > { %v843_v51 = vsub.f32 %v2456_v23, %v766_v63  ;;  %v844_v32 = vsub.f32 %v2458_v24, %v766_v63 }
 0x20e   : > { %v875_v44 = vmul.f32 1.442695, %v843_v51  ;;  %v877_v10 = vmul.f32 1.442695, %v844_v32 }
 0x20f   : > { %v771_v8 = vpop.permute.xlu1 %770 }
 0x210   : > { %2063 = vpow2.f32 %v875_v44  ;;  %v845_v15 = vsub.f32 %v2460_v25, %v771_v8  ;;  %v846_v11 = vsub.f32 %v2464_v27, %v771_v8 }
 0x211   : > { %2065 = vpow2.f32 %v877_v10 }
 0x212   : > { %v879_v6 = vmul.f32 1.442695, %v845_v15  ;;  %v881_v4 = vmul.f32 1.442695, %v846_v11 }
 0x213   : > { %v776_v9 = vpop.permute.xlu1 %775 }
 0x214   : > { %2067 = vpow2.f32 %v879_v6  ;;  %v847_v47 = vsub.f32 %v2468_v29, %v776_v9  ;;  %v848_v28 = vsub.f32 %v2470_v30, %v776_v9 }
 0x215   : > { %2069 = vpow2.f32 %v881_v4 }
 0x216   : > { %v883_v23 = vmul.f32 1.442695, %v847_v47  ;;  %v885_v24 = vmul.f32 1.442695, %v848_v28 }
 0x217   : > { %v781_v51 = vpop.permute.xlu1 %780 }
 0x218   : > { %2071 = vpow2.f32 %v883_v23  ;;  %v849_v32 = vsub.f32 %v2472_v31, %v781_v51  ;;  %v850_v25 = vsub.f32 %v2476_v33, %v781_v51 }
 0x219   : > { %2073 = vpow2.f32 %v885_v24 }
 0x21a   : > { %v2064_v27 = vpop.eup %2063  ;;  %v887_v8 = vmul.f32 1.442695, %v849_v32  ;;  %v889_v10 = vmul.f32 1.442695, %v850_v25 }
 0x21b   : > { %v2066_v11 = vpop.eup %2065  ;;  %v786_v15 = vpop.permute.xlu1 %785 }
 0x21c   : > { %2075 = vpow2.f32 %v887_v8  ;;  %v851_v29 = vsub.f32 %v2480_v35, %v786_v15  ;;  %v852_v30 = vsub.f32 %v2482_v36, %v786_v15  ;;  %v971_v4 = vadd.f32 %v2066_v11, %v2064_v27 }
 0x21d   : > { %2077 = vpow2.f32 %v889_v10  ;;  %v3195_v10 = vpack.c.bf16 %v2682_v20, %v2673_v40 }
 0x21e   : > { %v2068_v6 = vpop.eup %2067  ;;  %v891_v28 = vmul.f32 1.442695, %v851_v29  ;;  %v893_v44 = vmul.f32 1.442695, %v852_v30  ;;  %972 = vadd.xlane.f32.xlu1 %v971_v4 }
 0x21f   : > { %v2070_v31 = vpop.eup %2069  ;;  %v791_v47 = vpop.permute.xlu1 %790  ;;  %v1068_v33 = vpack.c.bf16 %v2068_v6, %v2064_v27 }
 0x220   : > { %2079 = vpow2.f32 %v891_v28  ;;  %v853_v63 = vsub.f32 %v2484_v37, %v791_v47  ;;  %v854_v9 = vsub.f32 %v2488_v39, %v791_v47  ;;  %v1069_v23 = vpack.c.bf16 %v2070_v31, %v2066_v11 }
 0x221   : > { %2081 = vpow2.f32 %v893_v44  ;;  %v974_v24 = vadd.f32 %v2070_v31, %v2068_v6  ;;  %v3194_v37 = vpack.c.bf16 %v2647_v26, %v2639_v18 }
 0x222   : > { %v2072_v35 = vpop.eup %2071  ;;  %v895_v51 = vmul.f32 1.442695, %v853_v63  ;;  %v897_v36 = vmul.f32 1.442695, %v854_v9  ;;  %1116 = vmatprep.mubr.bf16.mxu1 %v1069_v23 }
 0x223   : > { %v2074_v32 = vpop.eup %2073  ;;  %975 = vadd.xlane.f32.xlu0 %v974_v24  ;;  %1117 = vmatmul.mubr.bf16.vlgmr.msra.gmra.mrb[0].mxu1 %v1068_v33  ;;  %v796_v25 = vpop.permute.xlu1 %795 }
 0x224   : > { %2083 = vpow2.f32 %v895_v51  ;;  %v855_v8 = vsub.f32 %v2492_v41, %v796_v25  ;;  %v856_v27 = vsub.f32 %v2494_v42, %v796_v25  ;;  %1171 = vmatpush1.bf16.xpose.msra.mxu1 %v3194_v37  ;;  %v977_v39 = vadd.f32 %v2074_v32, %v2072_v35 }
 0x225   : > { %2085 = vpow2.f32 %v897_v36  ;;  %1172 = vmatprep.subr.bf16.mxu1 %v3195_v10  ;;  %v3198_v37 = vpack.c.bf16 %v2708_v53, %v2702_v5 }
 0x226   : > { %v2076_v11 = vpop.eup %2075  ;;  %v899_v15 = vmul.f32 1.442695, %v855_v8  ;;  %v901_v29 = vmul.f32 1.442695, %v856_v27 }
 0x227   : > { %v2078_v30 = vpop.eup %2077  ;;  %978 = vadd.xlane.f32.xlu0 %v977_v39  ;;  %v801_v4 = vpop.permute.xlu1 %800  ;;  %v1070_v6 = vpack.c.bf16 %v2076_v11, %v2072_v35 }
 0x228   : > { %2087 = vpow2.f32 %v899_v15  ;;  %v857_v41 = vsub.f32 %v2496_v43, %v801_v4  ;;  %v858_v42 = vsub.f32 %v2500_v45, %v801_v4  ;;  %v980_v18 = vadd.f32 %v2078_v30, %v2076_v11 }
 0x229   : > { %2089 = vpow2.f32 %v901_v29  ;;  %v1071_v26 = vpack.c.bf16 %v2078_v30, %v2074_v32  ;;  %v3196_v43 = vpack.c.bf16 %v2676_v59, %v2669_v21  ;;  %v3199_v4 = vpack.c.bf16 %v2744_v14, %v2738_v46 }
 0x22a   : > { %v2080_v28 = vpop.eup %2079  ;;  %v903_v44 = vmul.f32 1.442695, %v857_v41  ;;  %v905_v31 = vmul.f32 1.442695, %v858_v42  ;;  %981 = vadd.xlane.f32.xlu1 %v980_v18 }
 0x22b   : > { %v2082_v20 = vpop.eup %2081  ;;  %1124 = vmatprep.mubr.bf16.mxu1 %v1071_v26  ;;  %v806_v40 = vpop.permute.xlu1 %805 }
 0x22c   : > { %2091 = vpow2.f32 %v903_v44  ;;  %1125 = vmatmul.mubr.bf16.gmra.mrb[4].mxu1 %v1070_v6  ;;  %v859_v47 = vsub.f32 %v2536_v48, %v806_v40  ;;  %v860_v33 = vsub.f32 %v2538_v49, %v806_v40  ;;  %v983_v63 = vadd.f32 %v2082_v20, %v2080_v28 }
 0x22d   : > { %2093 = vpow2.f32 %v905_v31  ;;  %1173 = vmatpush1.bf16.xpose.msra.mxu1 %v3196_v43  ;;  %v811_v45 = vpop.permute.xlu0 %810  ;;  %v3197_v48 = vpack.c.bf16 %v2712_v34, %v2706_v19  ;;  %v3200_v44 = vpack.c.bf16 %v2740_v57, %v2734_v13 }
 0x22e   : > { %v2084_v9 = vpop.eup %2083  ;;  %v907_v23 = vmul.f32 1.442695, %v859_v47  ;;  %v909_v24 = vmul.f32 1.442695, %v860_v33  ;;  %v861_v35 = vsub.f32 %v2540_v50, %v811_v45  ;;  %v862_v51 = vsub.f32 %v2544_v52, %v811_v45  ;;  %984 = vadd.xlane.f32.xlu0 %v983_v63 }
 0x22f   : > { %1255 = vmatprep.subr.bf16.mxu1 %v3197_v48  ;;  %v2086_v49 = vpop.eup %2085  ;;  %v1072_v36 = vpack.c.bf16 %v2084_v9, %v2080_v28 }
 0x230   : > { %2095 = vpow2.f32 %v907_v23  ;;  %v911_v32 = vmul.f32 1.442695, %v861_v35  ;;  %v913_v25 = vmul.f32 1.442695, %v862_v51  ;;  %v986_v21 = vadd.f32 %v2086_v49, %v2084_v9 }
 0x231   : > { %2097 = vpow2.f32 %v909_v24  ;;  %v1073_v59 = vpack.c.bf16 %v2086_v49, %v2082_v20  ;;  %v3202_v35 = vpack.c.bf16 %v2772_v7, %v2766_v16 }
 0x232   : > { %v2088_v8 = vpop.eup %2087  ;;  %2099 = vpow2.f32 %v911_v32  ;;  %987 = vadd.xlane.f32.xlu1 %v986_v21  ;;  %v3203_v32 = vld [vmem:[#allocation8_spill] sm:$0xff]  ;;  %v3204_v21 = vld [vmem:[#allocation9_spill] sm:$0xff] }
 0x233   : > { %v2090_v27 = vpop.eup %2089  ;;  %2101 = vpow2.f32 %v913_v25  ;;  %1202 = vmatprep.mubr.bf16.mxu1 %v1073_v59  ;;  %v816_v50 = vpop.permute.xlu1 %815 }
 0x234   : > { %1203 = vmatmul.mubr.bf16.vlgmr.msra.gmra.mrb[8].mxu1 %v1072_v36  ;;  %v863_v52 = vsub.f32 %v2548_v54, %v816_v50  ;;  %v864_v19 = vsub.f32 %v2550_v55, %v816_v50  ;;  %v989_v34 = vadd.f32 %v2090_v27, %v2088_v8 }
 0x235   : > { %1256 = vmatpush1.bf16.xpose.msra.mxu1 %v3198_v37  ;;  %v821_v39 = vpop.permute.xlu0 %820  ;;  %v3206_v37 = vld [vmem:[#allocation42_spill] sm:$0xff] }
 0x236   : > { %v2092_v10 = vpop.eup %2091  ;;  %v915_v11 = vmul.f32 1.442695, %v863_v52  ;;  %v917_v15 = vmul.f32 1.442695, %v864_v19  ;;  %v865_v29 = vsub.f32 %v2552_v56, %v821_v39  ;;  %v866_v30 = vsub.f32 %v2556_v58, %v821_v39  ;;  %990 = vadd.xlane.f32.xlu0 %v989_v34  ;;  %1257 = vmatprep.subr.bf16.mxu1 %v3199_v4 }
 0x237   : > { %v2094_v54 = vpop.eup %2093  ;;  %v1074_v55 = vpack.c.bf16 %v2092_v10, %v2088_v8 }
 0x238   : > { %2103 = vpow2.f32 %v915_v11  ;;  %v919_v6 = vmul.f32 1.442695, %v865_v29  ;;  %v921_v41 = vmul.f32 1.442695, %v866_v30  ;;  %v992_v53 = vadd.f32 %v2094_v54, %v2092_v10  ;;  %v3209_v29 = vld [vmem:[#allocation12_spill] sm:$0xff]  ;;  %v3210_v30 = vld [vmem:[#allocation13_spill] sm:$0xff] }
 0x239   : > { %2105 = vpow2.f32 %v917_v15  ;;  %v1075_v5 = vpack.c.bf16 %v2094_v54, %v2090_v27  ;;  %v3208_v11 = vmov 0.0   ;;  %v3211_v4 = vsub.f32 %v3209_v29, %v3210_v30  ;;  %v3234_v29 = vld [vmem:[#allocation28_spill] sm:$0xff] }
 0x23a   : > { %v2096_v42 = vpop.eup %2095  ;;  %2107 = vpow2.f32 %v919_v6  ;;  %993 = vadd.xlane.f32.xlu1 %v992_v53  ;;  %237 = vst.msk [vmem:[#allocation4 + $0x8] sm:$0xff] %vm235_vm3, %v3208_v11  ;;  %236 = vst.msk [vmem:[#allocation4] sm:$0xff] %vm235_vm3, %v3208_v11 }
 0x23b   : > { %v2098_v18 = vpop.eup %2097  ;;  %2109 = vpow2.f32 %v921_v41  ;;  %1210 = vmatprep.mubr.bf16.mxu1 %v1075_v5  ;;  %v826_v56 = vpop.permute.xlu1 %825  ;;  %v733_v54 = vmul.f32 1.442695, %v3211_v4  ;;  %238 = vst.msk [vmem:[#allocation4 + $0x10] sm:$0xff] %vm235_vm3, %v3208_v11  ;;  %239 = vst.msk [vmem:[#allocation4 + $0x18] sm:$0xff] %vm235_vm3, %v3208_v11 }
 0x23c   : > { %v2100_v58 = vpop.eup %2099  ;;  %1211 = vmatmul.mubr.bf16.gmra.mrb[12].mxu1 %v1074_v55  ;;  %v867_v14 = vsub.f32 %v2560_v60, %v826_v56  ;;  %v868_v46 = vsub.f32 %v2562_v61, %v826_v56  ;;  %v995_v26 = vadd.f32 %v2098_v18, %v2096_v42  ;;  %v3201_v60 = vpack.c.bf16 %v2776_v12, %v2770_v1  ;;  %v3213_v56 = vld [vmem:[#allocation11_spill] sm:$0xff] }
 0x23d   : > { %v2102_v28 = vpop.eup %2101  ;;  %1258 = vmatpush1.bf16.xpose.msra.mxu1 %v3200_v44  ;;  %v831_v31 = vpop.permute.xlu0 %830  ;;  %v1076_v20 = vpack.c.bf16 %v2100_v58, %v2096_v42  ;;  %240 = vst.msk [vmem:[#allocation4 + $0x20] sm:$0xff] %vm235_vm3, %v3208_v11  ;;  %241 = vst.msk [vmem:[#allocation4 + $0x28] sm:$0xff] %vm235_vm3, %v3208_v11 }
 0x23e   : > { %v923_v40 = vmul.f32 1.442695, %v867_v14  ;;  %v925_v47 = vmul.f32 1.442695, %v868_v46  ;;  %v869_v33 = vsub.f32 %v2564_v62, %v831_v31  ;;  %v870_v63 = vsub.f32 %v2568_v0, %v831_v31  ;;  %996 = vadd.xlane.f32.xlu0 %v995_v26  ;;  %1340 = vmatprep.subr.bf16.mxu1 %v3201_v60  ;;  %242 = vst.msk [vmem:[#allocation4 + $0x30] sm:$0xff] %vm235_vm3, %v3208_v11  ;;  %v3215_v26 = vld [vmem:[#allocation16_spill] sm:$0xff] }
 0x23f   : > { %v998_v61 = vadd.f32 %v2102_v28, %v2100_v58  ;;  %v1077_v43 = vpack.c.bf16 %v2102_v28, %v2098_v18  ;;  %243 = vst.msk [vmem:[#allocation4 + $0x38] sm:$0xff] %vm235_vm3, %v3208_v11  ;;  %244 = vst.msk [vmem:[#allocation4 + $0x40] sm:$0xff] %vm235_vm3, %v3208_v11  ;;  %v3212_v18 = vld [vmem:[#allocation10_spill] sm:$0xff]  ;;  %v3216_v28 = vld [vmem:[#allocation17_spill] sm:$0xff] }
 0x240   : > { %2111 = vpow2.f32 %v923_v40  ;;  %v927_v45 = vmul.f32 1.442695, %v869_v33  ;;  %v929_v9 = vmul.f32 1.442695, %v870_v63  ;;  %245 = vst.msk [vmem:[#allocation4 + $0x48] sm:$0xff] %vm235_vm3, %v3208_v11  ;;  %246 = vst.msk [vmem:[#allocation4 + $0x50] sm:$0xff] %vm235_vm3, %v3208_v11  ;;  %v3214_v58 = vsub.f32 %v3212_v18, %v3213_v56 }
 0x241   : > { %2113 = vpow2.f32 %v925_v47  ;;  %999 = vadd.xlane.f32.xlu1 %v998_v61  ;;  %1287 = vmatprep.mubr.bf16.mxu1 %v1077_v43  ;;  %247 = vst.msk [vmem:[#allocation4 + $0x58] sm:$0xff] %vm235_vm3, %v3208_v11  ;;  %248 = vst.msk [vmem:[#allocation4 + $0x60] sm:$0xff] %vm235_vm3, %v3208_v11  ;;  %v3217_v44 = vsub.f32 %v3215_v26, %v3216_v28  ;;  %v3218_v47 = vld [vmem:[#allocation14_spill] sm:$0xff]  ;;  %v3219_v33 = vld [vmem:[#allocation15_spill] sm:$0xff] }
 0x242   : > { %v2104_v57 = vpop.eup %2103  ;;  %2115 = vpow2.f32 %v927_v45  ;;  %249 = vst.msk [vmem:[#allocation4 + $0x68] sm:$0xff] %vm235_vm3, %v3208_v11  ;;  %250 = vst.msk [vmem:[#allocation4 + $0x70] sm:$0xff] %vm235_vm3, %v3208_v11  ;;  %v731_v14 = vmul.f32 1.442695, %v3214_v58  ;;  %v3220_v63 = vsub.f32 %v3218_v47, %v3219_v33  ;;  %v939_v43 = vld [vmem:[#allocation3] sm:$0xff]  ;;  %v3221_v45 = vld [vmem:[#allocation18_spill] sm:$0xff] }
 0x243   : > { %v2106_v13 = vpop.eup %2105  ;;  %2117 = vpow2.f32 %v929_v9  ;;  %v836_v62 = vpop.permute.xlu1 %835  ;;  %251 = vst.msk [vmem:[#allocation4 + $0x78] sm:$0xff] %vm235_vm3, %v3208_v11  ;;  %v737_v31 = vmul.f32 1.442695, %v3217_v44  ;;  %v3222_v9 = vld [vmem:[#allocation20_spill] sm:$0xff]  ;;  %v945_v28 = vld [vmem:[#allocation3 + $0x30] sm:$0xff] }
 0x244   : > { %v2108_v23 = vpop.eup %2107  ;;  %1288 = vmatmul.mubr.bf16.vlgmr.msra.gmra.mrb[16].mxu1 %v1076_v20  ;;  %v871_v0 = vsub.f32 %v2572_v2, %v836_v62  ;;  %v872_v1 = vsub.f32 %v2574_v3, %v836_v62  ;;  %v1001_v12 = vadd.f32 %v2106_v13, %v2104_v57  ;;  %v3205_v2 = vpack.c.bf16 %v2804_v38, %v2800_v22 }
 0x245   : > { %v2110_v24 = vpop.eup %2109  ;;  %1341 = vmatpush1.bf16.xpose.msra.mxu1 %v3202_v35  ;;  %v841_v51 = vpop.permute.xlu0 %840  ;;  %v1078_v48 = vpack.c.bf16 %v2108_v23, %v2104_v57  ;;  %v3207_v22 = vpack.c.bf16 %v2802_v17, %v3206_v37  ;;  %v735_v60 = vmul.f32 1.442695, %v3220_v63  ;;  %v3223_v57 = vsub.f32 %v3221_v45, %v3222_v9  ;;  %v946_v45 = vld [vmem:[#allocation3 + $0x38] sm:$0xff] }
 0x246   : > { %v931_v49 = vmul.f32 1.442695, %v871_v0  ;;  %v933_v36 = vmul.f32 1.442695, %v872_v1  ;;  %v873_v25 = vsub.f32 %v3203_v32, %v841_v51  ;;  %v874_v59 = vsub.f32 %v3204_v21, %v841_v51  ;;  %1002 = vadd.xlane.f32.xlu0 %v1001_v12  ;;  %1342 = vmatprep.subr.bf16.mxu1 %v3205_v2  ;;  %v940_v1 = vld [vmem:[#allocation3 + $0x8] sm:$0xff]  ;;  %v3224_v12 = vld [vmem:[#allocation19_spill] sm:$0xff] }
 0x247   : > { %v1004_v3 = vadd.f32 %v2110_v24, %v2108_v23  ;;  %v1079_v8 = vpack.c.bf16 %v2110_v24, %v2106_v13  ;;  %v739_v13 = vmul.f32 1.442695, %v3223_v57  ;;  %v3225_v24 = vld [vmem:[#allocation21_spill] sm:$0xff]  ;;  %v3227_v32 = vld [vmem:[#allocation22_spill] sm:$0xff]  ;;  %v3242_v9 = vld [vmem:[#allocation31_spill] sm:$0xff] }
 0x248   : > { %2119 = vpow2.f32 %v931_v49  ;;  %v935_v27 = vmul.f32 1.442695, %v873_v25  ;;  %v937_v50 = vmul.f32 1.442695, %v874_v59  ;;  %v3226_v35 = vsub.f32 %v3224_v12, %v3225_v24  ;;  %v3228_v25 = vld [vmem:[#allocation24_spill] sm:$0xff]  ;;  %v3243_v57 = vld [vmem:[#allocation33_spill] sm:$0xff] }
 0x249   : > { %2121 = vpow2.f32 %v933_v36  ;;  %1005 = vadd.xlane.f32.xlu1 %v1004_v3  ;;  %1295 = vmatprep.mubr.bf16.mxu1 %v1079_v8  ;;  %v941_v36 = vld [vmem:[#allocation3 + $0x10] sm:$0xff]  ;;  %v3229_v21 = vsub.f32 %v3227_v32, %v3228_v25  ;;  %v942_v8 = vld [vmem:[#allocation3 + $0x18] sm:$0xff]  ;;  %v3246_v32 = vld [vmem:[#allocation36_spill] sm:$0xff] }
 0x24a   : > { %v2112_v16 = vpop.eup %2111  ;;  %2123 = vpow2.f32 %v935_v27  ;;  %v741_v51 = vmul.f32 1.442695, %v3226_v35 }
 0x24b   : > { %v2114_v7 = vpop.eup %2113  ;;  %2125 = vpow2.f32 %v937_v50  ;;  %v743_v59 = vmul.f32 1.442695, %v3229_v21  ;;  %v3230_v50 = vld [vmem:[#allocation23_spill] sm:$0xff] }
 0x24c   : > { %v2116_v52 = vpop.eup %2115  ;;  %1296 = vmatmul.mubr.bf16.gmra.mrb[20].mxu1 %v1078_v48  ;;  %v1007_v19 = vadd.f32 %v2114_v7, %v2112_v16  ;;  %2127 = vpow2.f32 %v733_v54 }
 0x24d   : > { %v2118_v34 = vpop.eup %2117  ;;  %1343 = vmatpush1.bf16.xpose.msra.mxu1 %v3207_v22  ;;  %v1080_v38 = vpack.c.bf16 %v2116_v52, %v2112_v16  ;;  %2129 = vpow2.f32 %v731_v14  ;;  %v3231_v16 = vld [vmem:[#allocation25_spill] sm:$0xff] }
 0x24e   : > { %1008 = vadd.xlane.f32.xlu0 %v1007_v19  ;;  %v1010_v39 = vadd.f32 %v2118_v34, %v2116_v52  ;;  %v1081_v10 = vpack.c.bf16 %v2118_v34, %v2114_v7  ;;  %1951 = vmatprep.subr.bf16.mxu1 %v3208_v11  ;;  %2131 = vpow2.f32 %v737_v31  ;;  %v3232_v7 = vsub.f32 %v3230_v50, %v3231_v16  ;;  %v3249_v50 = vld [vmem:[#allocation37_spill] sm:$0xff] }
 0x24f   : > { %2133 = vpow2.f32 %v735_v60 }
 0x250   : > { %1011 = vadd.xlane.f32.xlu1 %v1010_v39  ;;  %1372 = vmatprep.mubr.bf16.mxu1 %v1081_v10  ;;  %2135 = vpow2.f32 %v739_v13  ;;  %v745_v52 = vmul.f32 1.442695, %v3232_v7  ;;  %v943_v39 = vld [vmem:[#allocation3 + $0x20] sm:$0xff]  ;;  %v3244_v13 = vsub.f32 %v3242_v9, %v3243_v57 }
 0x251   : > { %2137 = vpow2.f32 %v741_v51  ;;  %v947_v51 = vld [vmem:[#allocation3 + $0x40] sm:$0xff] }
 0x252   : > { %v2120_v15 = vpop.eup %2119  ;;  %2139 = vpow2.f32 %v743_v59 }
 0x253   : > { %v2122_v55 = vpop.eup %2121 }
 0x254   : > { %v2124_v6 = vpop.eup %2123  ;;  %1373 = vmatmul.mubr.bf16.vlgmr.msra.gmra.mrb[24].mxu1 %v1080_v38  ;;  %v1013_v41 = vadd.f32 %v2122_v55, %v2120_v15 }
 0x255   : > { %v2126_v53 = vpop.eup %2125  ;;  %v1082_v17 = vpack.c.bf16 %v2124_v6, %v2120_v15  ;;  %v3233_v15 = vld [vmem:[#allocation26_spill] sm:$0xff] }
 0x256   : > { %1014 = vadd.xlane.f32.xlu0 %v1013_v41  ;;  %v1083_v5 = vpack.c.bf16 %v2126_v53, %v2122_v55  ;;  %v1016_v42 = vadd.f32 %v2126_v53, %v2124_v6  ;;  %v2128_v46 = vpop.eup %2127  ;;  %v3235_v30 = vsub.f32 %v3233_v15, %v3234_v29  ;;  %v944_v53 = vld [vmem:[#allocation3 + $0x28] sm:$0xff]  ;;  %v949_v15 = vld [vmem:[#allocation3 + $0x50] sm:$0xff] }
 0x257   : > { %v2130_v20 = vpop.eup %2129  ;;  %v956_v48 = vmul.f32 %v2128_v46, %v940_v1 }
 0x258   : > { %1380 = vmatprep.mubr.bf16.mxu1 %v1083_v5  ;;  %v2132_v40 = vpop.eup %2131  ;;  %v955_v62 = vmul.f32 %v2130_v20, %v939_v43  ;;  %v747_v4 = vmul.f32 1.442695, %v3235_v30  ;;  %v3237_v5 = vld [vmem:[#allocation29_spill] sm:$0xff]  ;;  %v3251_v30 = vld [vmem:[#allocation38_spill] sm:$0xff] }
 0x259   : > { %v2134_v61 = vpop.eup %2133  ;;  %v958_v37 = vmul.f32 %v2132_v40, %v942_v8  ;;  %v948_v8 = vld [vmem:[#allocation3 + $0x48] sm:$0xff] }
 0x25a   : > { %v957_v3 = vmul.f32 %v2134_v61, %v941_v36  ;;  %v2136_v22 = vpop.eup %2135  ;;  %v3245_v36 = vld [vmem:[#allocation34_spill] sm:$0xff] }
 0x25b   : > { %v959_v54 = vmul.f32 %v2136_v22, %v943_v39  ;;  %v2138_v6 = vpop.eup %2137  ;;  %v3247_v25 = vsub.f32 %v3245_v36, %v3246_v32 }
 0x25c   : > { %1381 = vmatmul.mubr.bf16.gmra.mrb[28].mxu1 %v1082_v17  ;;  %v3236_v17 = vld [vmem:[#allocation27_spill] sm:$0xff]  ;;  %v960_v58 = vmul.f32 %v2138_v6, %v944_v53 }
 0x25d   : > { %v755_v21 = vmul.f32 1.442695, %v3247_v25  ;;  %1955 = vmatprep.mubr.msk.bf16.mxu1 %vm2274_vm4, %v3208_v11 }
 0x261   : > { %1144 = vperm.xlu1 %2045, %v2128_v46   ;;  %v2140_v46 = vpop.eup %2139 }
 0x262   : > { %v961_v60 = vmul.f32 %v2140_v46, %v945_v28  ;;  %v951_v28 = vld [vmem:[#allocation3 + $0x60] sm:$0xff] }
 0x26c   : > { %1139 = vperm.xlu0 %2044, %v2130_v20   ;;  %v3239_v20 = vld [vmem:[#allocation30_spill] sm:$0xff] }
 0x270   : > { %1154 = vperm.xlu0 %2044, %v2132_v40   ;;  %v3240_v40 = vld [vmem:[#allocation32_spill] sm:$0xff] }
 0x271   : > { %v3241_v47 = vsub.f32 %v3239_v20, %v3240_v40  ;;  %v952_v40 = vld [vmem:[#allocation3 + $0x68] sm:$0xff] }
 0x273   : > { %v751_v33 = vmul.f32 1.442695, %v3241_v47 }
 0x285   : > { %1017 = vadd.xlane.f32.xlu1 %v1016_v42  ;;  %v3238_v42 = vsub.f32 %v3236_v17, %v3237_v5  ;;  %v950_v17 = vld [vmem:[#allocation3 + $0x58] sm:$0xff] }
 0x287   : > { %v749_v18 = vmul.f32 1.442695, %v3238_v42 }
 0x296   : > { %1149 = vperm.xlu1 %2045, %v2134_v61  }
 0x2ab   : > { %v973_v23 = vpop.xlane.xlu1 %972 }
 0x2ac   : > { %v1019_v0 = vadd.f32 %v973_v23, %v955_v62  ;;  %v753_v62 = vmul.f32 1.442695, %v3244_v13  ;;  %v953_v13 = vld [vmem:[#allocation3 + $0x70] sm:$0xff] }
 0x2ae   : > { %1036 = vst.msk [vmem:[#allocation3] sm:$0xff] %vm202_vm2, %v1019_v0 }
 0x2b0   : > { %v976_v49 = vpop.xlane.xlu0 %975 }
 0x2b1   : > { %v1020_v2 = vadd.f32 %v976_v49, %v956_v48 }
 0x2b3   : > { %1037 = vst.msk [vmem:[#allocation3 + $0x8] sm:$0xff] %vm202_vm2, %v1020_v2 }
 0x2b4   : > { %v979_v27 = vpop.xlane.xlu0 %978 }
 0x2b5   : > { %v1021_v19 = vadd.f32 %v979_v27, %v957_v3  ;;  %v1428_v34 = vld [vmem:[#allocation3] sm:$0xff]  ;;  %v3248_v27 = vld [vmem:[#allocation35_spill] sm:$0xff] }
 0x2b6   : > { %2141 = vrcp.f32 %v1428_v34  ;;  %v3250_v16 = vsub.f32 %v3248_v27, %v3249_v50  ;;  %v1134_v50 = vld [vmem:[#allocation4 + $0x8] sm:$0xff] }
 0x2b7   : > { %1038 = vst.msk [vmem:[#allocation3 + $0x10] sm:$0xff] %vm202_vm2, %v1021_v19  ;;  %v982_v38 = vpop.xlane.xlu1 %981  ;;  %2143 = vpow2.f32 %v745_v52 }
 0x2b8   : > { %v1022_v10 = vadd.f32 %v982_v38, %v958_v37  ;;  %v757_v7 = vmul.f32 1.442695, %v3250_v16 }
 0x2ba   : > { %1039 = vst.msk [vmem:[#allocation3 + $0x18] sm:$0xff] %vm202_vm2, %v1022_v10  ;;  %v1429_v55 = vld [vmem:[#allocation3 + $0x8] sm:$0xff] }
 0x2bb   : > { %v985_v41 = vpop.xlane.xlu0 %984  ;;  %2145 = vrcp.f32 %v1429_v55 }
 0x2bc   : > { %v1023_v56 = vadd.f32 %v985_v41, %v959_v54  ;;  %2147 = vpow2.f32 %v747_v4  ;;  %v3252_v4 = vld [vmem:[#allocation40_spill] sm:$0xff] }
 0x2bd   : > { %v3253_v54 = vsub.f32 %v3251_v30, %v3252_v4 }
 0x2be   : > { %1040 = vst.msk [vmem:[#allocation3 + $0x20] sm:$0xff] %vm202_vm2, %v1023_v56  ;;  %v1430_v14 = vld [vmem:[#allocation3 + $0x10] sm:$0xff] }
 0x2bf   : > { %v988_v26 = vpop.xlane.xlu1 %987  ;;  %2149 = vrcp.f32 %v1430_v14  ;;  %v759_v55 = vmul.f32 1.442695, %v3253_v54 }
 0x2c0   : > { %v2142_v44 = vpop.eup %2141  ;;  %2151 = vpow2.f32 %v749_v18  ;;  %v1024_v31 = vadd.f32 %v988_v26, %v960_v58 }
 0x2c1   : > { %1478 = vperm.xlu1 %2045, %v2142_v44   ;;  %v1431_v63 = vld [vmem:[#allocation3 + $0x18] sm:$0xff]  ;;  %v2144_v61 = vpop.eup %2143 }
 0x2c2   : > { %1041 = vst.msk [vmem:[#allocation3 + $0x28] sm:$0xff] %vm202_vm2, %v1024_v31  ;;  %2153 = vrcp.f32 %v1431_v63  ;;  %v962_v12 = vmul.f32 %v2144_v61, %v946_v45 }
 0x2c3   : > { %v991_v43 = vpop.xlane.xlu0 %990  ;;  %2155 = vpow2.f32 %v751_v33 }
 0x2c4   : > { %v1025_v23 = vadd.f32 %v991_v43, %v961_v60 }
 0x2c5   : > { %v2146_v0 = vpop.eup %2145  ;;  %1225 = vperm.xlu1 %2045, %v2136_v22   ;;  %v1432_v1 = vld [vmem:[#allocation3 + $0x20] sm:$0xff] }
 0x2c6   : > { %1042 = vst.msk [vmem:[#allocation3 + $0x30] sm:$0xff] %vm202_vm2, %v1025_v23  ;;  %1483 = vperm.xlu0 %2044, %v2146_v0   ;;  %2157 = vrcp.f32 %v1432_v1  ;;  %v2148_v24 = vpop.eup %2147  ;;  %v3254_v1 = vld [vmem:[#allocation39_spill] sm:$0xff] }
 0x2c7   : > { %v994_v35 = vpop.xlane.xlu1 %993  ;;  %2159 = vpow2.f32 %v753_v62  ;;  %v963_v3 = vmul.f32 %v2148_v24, %v947_v51 }
 0x2c8   : > { %v1026_v48 = vadd.f32 %v994_v35, %v962_v12  ;;  %v3255_v12 = vld [vmem:[#allocation41_spill] sm:$0xff] }
 0x2c9   : > { %v2150_v49 = vpop.eup %2149  ;;  %v1433_v59 = vld [vmem:[#allocation3 + $0x28] sm:$0xff] }
 0x2ca   : > { %v2152_v2 = vpop.eup %2151  ;;  %1043 = vst.msk [vmem:[#allocation3 + $0x38] sm:$0xff] %vm202_vm2, %v1026_v48  ;;  %1230 = vperm.xlu0 %2044, %v2138_v6   ;;  %1488 = vperm.xlu1 %2045, %v2150_v49   ;;  %2161 = vrcp.f32 %v1433_v59 }
 0x2cb   : > { %v997_v52 = vpop.xlane.xlu0 %996  ;;  %2163 = vpow2.f32 %v755_v21  ;;  %v964_v37 = vmul.f32 %v2152_v2, %v948_v8  ;;  %v1133_v8 = vld [vmem:[#allocation4] sm:$0xff] }
 0x2cc   : > { %v2154_v19 = vpop.eup %2153  ;;  %v1027_v34 = vadd.f32 %v997_v52, %v963_v3 }
 0x2cd   : > { %v1434_v22 = vld [vmem:[#allocation3 + $0x30] sm:$0xff]  ;;  %v2156_v39 = vpop.eup %2155 }
 0x2ce   : > { %1044 = vst.msk [vmem:[#allocation3 + $0x40] sm:$0xff] %vm202_vm2, %v1027_v34  ;;  %1235 = vperm.xlu1 %2045, %v2140_v46   ;;  %1493 = vperm.xlu0 %2044, %v2154_v19   ;;  %v1000_v38 = vpop.xlane.xlu1 %999  ;;  %2165 = vrcp.f32 %v1434_v22  ;;  %v965_v53 = vmul.f32 %v2156_v39, %v949_v15 }
 0x2cf   : > { %2167 = vpow2.f32 %v757_v7  ;;  %v1028_v10 = vadd.f32 %v1000_v38, %v964_v37 }
 0x2d0   : > { %v2158_v29 = vpop.eup %2157 }
 0x2d1   : > { %1045 = vst.msk [vmem:[#allocation3 + $0x48] sm:$0xff] %vm202_vm2, %v1028_v10  ;;  %v1435_v6 = vld [vmem:[#allocation3 + $0x38] sm:$0xff]  ;;  %v2160_v41 = vpop.eup %2159 }
 0x2d2   : > { %1498 = vperm.xlu1 %2045, %v2158_v29   ;;  %1240 = vperm.xlu0 %2044, %v2144_v61   ;;  %2169 = vrcp.f32 %v1435_v6  ;;  %v966_v56 = vmul.f32 %v2160_v41, %v950_v17  ;;  %v1136_v29 = vld [vmem:[#allocation4 + $0x18] sm:$0xff] }
 0x2d3   : > { %v1003_v5 = vpop.xlane.xlu0 %1002  ;;  %2171 = vpow2.f32 %v759_v55 }
 0x2d4   : > { %v2162_v42 = vpop.eup %2161  ;;  %v1029_v18 = vadd.f32 %v1003_v5, %v965_v53 }
 0x2d5   : > { %v1436_v58 = vld [vmem:[#allocation3 + $0x40] sm:$0xff]  ;;  %v2164_v46 = vpop.eup %2163 }
 0x2d6   : > { %1046 = vst.msk [vmem:[#allocation3 + $0x50] sm:$0xff] %vm202_vm2, %v1029_v18  ;;  %1310 = vperm.xlu1 %2045, %v2148_v24   ;;  %1503 = vperm.xlu0 %2044, %v2162_v42   ;;  %v1006_v14 = vpop.xlane.xlu1 %1005  ;;  %2173 = vrcp.f32 %v1436_v58  ;;  %v967_v47 = vmul.f32 %v2164_v46, %v951_v28  ;;  %v3256_v24 = vsub.f32 %v3254_v1, %v3255_v12 }
 0x2d7   : > { %v1030_v26 = vadd.f32 %v1006_v14, %v966_v56  ;;  %v954_v56 = vld [vmem:[#allocation3 + $0x78] sm:$0xff] }
 0x2d8   : > { %v2166_v44 = vpop.eup %2165  ;;  %v1437_v31 = vld [vmem:[#allocation3 + $0x48] sm:$0xff]  ;;  %v761_v35 = vmul.f32 1.442695, %v3256_v24 }
 0x2d9   : > { %v2168_v20 = vpop.eup %2167  ;;  %1047 = vst.msk [vmem:[#allocation3 + $0x58] sm:$0xff] %vm202_vm2, %v1030_v26  ;;  %2175 = vrcp.f32 %v1437_v31 }
 0x2da   : > { %1508 = vperm.xlu1 %2045, %v2166_v44   ;;  %1315 = vperm.xlu0 %2044, %v2152_v2   ;;  %v968_v61 = vmul.f32 %v2168_v20, %v952_v40 }
 0x2db   : > { %v1009_v33 = vpop.xlane.xlu0 %1008 }
 0x2dc   : > { %v2170_v63 = vpop.eup %2169  ;;  %v1031_v60 = vadd.f32 %v1009_v33, %v967_v47 }
 0x2dd   : > { %v1012_v43 = vpop.xlane.xlu1 %1011  ;;  %v1438_v45 = vld [vmem:[#allocation3 + $0x50] sm:$0xff]  ;;  %v2172_v57 = vpop.eup %2171 }
 0x2de   : > { %1048 = vst.msk [vmem:[#allocation3 + $0x60] sm:$0xff] %vm202_vm2, %v1031_v60  ;;  %1320 = vperm.xlu1 %2045, %v2156_v39   ;;  %1513 = vperm.xlu0 %2044, %v2170_v63   ;;  %v1032_v9 = vadd.f32 %v1012_v43, %v968_v61  ;;  %2177 = vrcp.f32 %v1438_v45  ;;  %v969_v0 = vmul.f32 %v2172_v57, %v953_v13 }
 0x2e0   : > { %v2174_v62 = vpop.eup %2173  ;;  %1049 = vst.msk [vmem:[#allocation3 + $0x68] sm:$0xff] %vm202_vm2, %v1032_v9  ;;  %v1439_v23 = vld [vmem:[#allocation3 + $0x58] sm:$0xff] }
 0x2e1   : > { %2179 = vrcp.f32 %v1439_v23  ;;  %v1145_v16 = vpop.permute.xlu1 %1144 }
 0x2e2   : > { %1518 = vperm.xlu1 %2045, %v2174_v62   ;;  %1325 = vperm.xlu0 %2044, %v2160_v41   ;;  %v1158_v34 = vmul.f32 %v1145_v16, %v1134_v50  ;;  %v1220_v16 = vld [vmem:[#allocation4 + $0x28] sm:$0xff] }
 0x2e3   : > { %v1015_v51 = vpop.xlane.xlu0 %1014  ;;  %v2176_v49 = vpop.eup %2175 }
 0x2e4   : > { %v1033_v48 = vadd.f32 %v1015_v51, %v969_v0 }
 0x2e5   : > { %v1440_v36 = vld [vmem:[#allocation3 + $0x60] sm:$0xff] }
 0x2e6   : > { %1050 = vst.msk [vmem:[#allocation3 + $0x70] sm:$0xff] %vm202_vm2, %v1033_v48  ;;  %1395 = vperm.xlu1 %2045, %v2164_v46   ;;  %1523 = vperm.xlu0 %2044, %v2176_v49   ;;  %2181 = vrcp.f32 %v1440_v36 }
 0x2e7   : > { %2183 = vpow2.f32 %v761_v35  ;;  %v1441_v25 = vld [vmem:[#allocation3 + $0x68] sm:$0xff] }
 0x2e8   : > { %v2178_v32 = vpop.eup %2177  ;;  %2185 = vrcp.f32 %v1441_v25 }
 0x2ea   : > { %1528 = vperm.xlu1 %2045, %v2178_v32   ;;  %1400 = vperm.xlu0 %2044, %v2168_v20   ;;  %v1135_v20 = vld [vmem:[#allocation4 + $0x10] sm:$0xff]  ;;  %v1219_v32 = vld [vmem:[#allocation4 + $0x20] sm:$0xff] }
 0x2eb   : > { %v2180_v21 = vpop.eup %2179  ;;  %v1140_v27 = vpop.permute.xlu0 %1139 }
 0x2ec   : > { %v1157_v52 = vmul.f32 %v1140_v27, %v1133_v8 }
 0x2ed   : > { %v1442_v59 = vld [vmem:[#allocation3 + $0x70] sm:$0xff] }
 0x2ee   : > { %1405 = vperm.xlu1 %2045, %v2172_v57   ;;  %1533 = vperm.xlu0 %2044, %v2180_v21   ;;  %2187 = vrcp.f32 %v1442_v59 }
 0x2ef   : > { %v1155_v30 = vpop.permute.xlu0 %1154 }
 0x2f0   : > { %v2182_v2 = vpop.eup %2181  ;;  %v1160_v54 = vmul.f32 %v1155_v30, %v1136_v29 }
 0x2f1   : > { %v2184_v3 = vpop.eup %2183 }
 0x2f2   : > { %1538 = vperm.xlu1 %2045, %v2182_v2   ;;  %1410 = vperm.xlu0 %2044, %v2184_v3   ;;  %v2186_v7 = vpop.eup %2185  ;;  %v970_v26 = vmul.f32 %v2184_v3, %v954_v56  ;;  %v1304_v56 = vld [vmem:[#allocation4 + $0x40] sm:$0xff] }
 0x2f6   : > { %1543 = vperm.xlu0 %2044, %v2186_v7   ;;  %v1118_v19 = vpop.f32.mrb[0].mxu1 }
 0x2f7   : > { %v1161_v37 = vadd.f32 %v1157_v52, %v1118_v19  ;;  %v1120_v22 = vpop.f32.mrb[1].mxu1 }
 0x2f8   : > { %v2188_v38 = vpop.eup %2187  ;;  %v1121_v39 = vpop.f32.mrb[2].mxu1  ;;  %v1221_v22 = vld [vmem:[#allocation4 + $0x30] sm:$0xff] }
 0x2f9   : > { %1166 = vst.msk [vmem:[#allocation4] sm:$0xff] %vm235_vm3, %v1161_v37  ;;  %v1162_v10 = vadd.f32 %v1158_v34, %v1121_v39  ;;  %1548 = vperm.xlu1 %2045, %v2188_v38   ;;  %v1123_v15 = vpop.f32.mrb[3].mxu1 }
 0x2fb   : > { %1167 = vst.msk [vmem:[#allocation4 + $0x8] sm:$0xff] %vm235_vm3, %v1162_v10 }
 0x2ff   : > { %v1126_v4 = vpop.f32.mrb[4].mxu1 }
 0x300   : > { %v1128_v55 = vpop.f32.mrb[5].mxu1  ;;  %v1460_v21 = vld [vmem:[#allocation4] sm:$0xff] }
 0x301   : > { %v1129_v6 = vpop.f32.mrb[6].mxu1  ;;  %v1222_v55 = vld [vmem:[#allocation4 + $0x38] sm:$0xff] }
 0x302   : > { %v1164_v41 = vadd.f32 %v1160_v54, %v1129_v6  ;;  %v1131_v53 = vpop.f32.mrb[7].mxu1  ;;  %v1461_v2 = vld [vmem:[#allocation4 + $0x8] sm:$0xff] }
 0x304   : > { %1169 = vst.msk [vmem:[#allocation4 + $0x18] sm:$0xff] %vm235_vm3, %v1164_v41 }
 0x307   : > { %v1204_v17 = vpop.f32.mrb[8].mxu1 }
 0x308   : > { %v1206_v5 = vpop.f32.mrb[9].mxu1 }
 0x309   : > { %v1207_v42 = vpop.f32.mrb[10].mxu1 }
 0x30a   : > { %v1209_v18 = vpop.f32.mrb[11].mxu1 }
 0x30b   : > { %v1463_v15 = vld [vmem:[#allocation4 + $0x18] sm:$0xff] }
 0x30f   : > { %v2976_v58 = vpop.f32.mrb[12].mxu1 }
 0x310   : > { %v1214_v14 = vpop.f32.mrb[13].mxu1 }
 0x311   : > { %v2978_v46 = vpop.f32.mrb[14].mxu1 }
 0x312   : > { %v1217_v28 = vpop.f32.mrb[15].mxu1  ;;  %v1018_v44 = vpop.xlane.xlu1 %1017 }
 0x313   : > { %v1034_v31 = vadd.f32 %v1018_v44, %v970_v26 }
 0x315   : > { %1051 = vst.msk [vmem:[#allocation3 + $0x78] sm:$0xff] %vm202_vm2, %v1034_v31 }
 0x316   : > { %v1150_v40 = vpop.permute.xlu1 %1149 }
 0x317   : > { %v1159_v47 = vmul.f32 %v1150_v40, %v1135_v20  ;;  %v2981_v33 = vpop.f32.mrb[16].mxu1  ;;  %v1305_v40 = vld [vmem:[#allocation4 + $0x48] sm:$0xff] }
 0x318   : > { %v1291_v63 = vpop.f32.mrb[17].mxu1 }
 0x319   : > { %v1163_v60 = vadd.f32 %v1159_v47, %v1126_v4  ;;  %v2983_v61 = vpop.f32.mrb[18].mxu1  ;;  %v1580_v47 = vld [vmem:[%s3118_s2] sm:$0x3] }
 0x31a   : > { %v1294_v43 = vpop.f32.mrb[19].mxu1 }
 0x31b   : > { %1168 = vst.msk [vmem:[#allocation4 + $0x10] sm:$0xff] %vm235_vm3, %v1163_v60 }
 0x31c   : > { %v1443_v45 = vld [vmem:[#allocation3 + $0x78] sm:$0xff] }
 0x31d   : > { %2189 = vrcp.f32 %v1443_v45 }
 0x31f   : > { %v2986_v9 = vpop.f32.mrb[20].mxu1 }
 0x320   : > { %v1299_v57 = vpop.f32.mrb[21].mxu1 }
 0x321   : > { %v2988_v13 = vpop.f32.mrb[22].mxu1 }
 0x322   : > { %v1302_v62 = vpop.f32.mrb[23].mxu1  ;;  %v1462_v39 = vld [vmem:[#allocation4 + $0x10] sm:$0xff] }
 0x327   : > { %v2190_v23 = vpop.eup %2189  ;;  %v2990_v0 = vpop.f32.mrb[24].mxu1 }
 0x328   : > { %v1376_v1 = vpop.f32.mrb[25].mxu1  ;;  %1553 = vperm.xlu0 %2044, %v2190_v23   ;;  %v1306_v23 = vld [vmem:[#allocation4 + $0x50] sm:$0xff] }
 0x329   : > { %v2992_v12 = vpop.f32.mrb[26].mxu1 }
 0x32a   : > { %v1379_v24 = vpop.f32.mrb[27].mxu1 }
 0x32f   : > { %v2994_v35 = vpop.f32.mrb[28].mxu1 }
 0x330   : > { %v1384_v51 = vpop.f32.mrb[29].mxu1 }
 0x331   : > { %v2996_v48 = vpop.f32.mrb[30].mxu1 }
 0x332   : > { %v1387_v49 = vpop.f32.mrb[31].mxu1 }
 0x340   : > { %v1479_v36 = vpop.permute.xlu1 %1478 }
 0x341   : > { %v1556_v8 = vmul.f32 %v1479_v36, %v1460_v21 }
 0x344   : > { %v1226_v25 = vpop.permute.xlu1 %1225 }
 0x345   : > { %v1484_v59 = vpop.permute.xlu0 %1483  ;;  %v1243_v3 = vmul.f32 %v1226_v25, %v1219_v32  ;;  %v1307_v25 = vld [vmem:[#allocation4 + $0x58] sm:$0xff] }
 0x346   : > { %v1557_v27 = vmul.f32 %v1484_v59, %v1461_v2 }
 0x347   : > { %v1247_v50 = vadd.f32 %v1243_v3, %v1204_v17 }
 0x348   : > { %v1572_v7 = vpack.c.bf16 %v1557_v27, %v1556_v8 }
 0x349   : > { %1251 = vst.msk [vmem:[#allocation4 + $0x20] sm:$0xff] %vm235_vm3, %v1247_v50  ;;  %v1231_v52 = vpop.permute.xlu0 %1230  ;;  %v1489_v19 = vpop.permute.xlu1 %1488  ;;  %v1389_v50 = vld [vmem:[#allocation4 + $0x60] sm:$0xff] }
 0x34a   : > { %v1244_v34 = vmul.f32 %v1231_v52, %v1220_v16  ;;  %v1585_v37 = vsel %vm235_vm3, %v1572_v7, 0  ;;  %v1558_v30 = vmul.f32 %v1489_v19, %v1462_v39 }
 0x34b   : > { %1952 = vmatpush3.bf16.xpose.msra.mxu1 %v1585_v37 }
 0x34c   : > { %v1248_v38 = vadd.f32 %v1244_v34, %v1207_v42  ;;  %1953 = vmatprep.subr.bf16.mxu1 %v3208_v11 }
 0x34d   : > { %v1494_v10 = vpop.permute.xlu0 %1493  ;;  %v1236_v29 = vpop.permute.xlu1 %1235 }
 0x34e   : > { %1252 = vst.msk [vmem:[#allocation4 + $0x28] sm:$0xff] %vm235_vm3, %v1248_v38  ;;  %v1559_v4 = vmul.f32 %v1494_v10, %v1463_v15  ;;  %v1245_v54 = vmul.f32 %v1236_v29, %v1221_v22  ;;  %v1390_v22 = vld [vmem:[#allocation4 + $0x68] sm:$0xff]  ;;  %v1923_v38 = vld [vmem:[%s3118_s2 + $0x2] sm:$0x3] }
 0x350   : > { %v1573_v6 = vpack.c.bf16 %v1559_v4, %v1558_v30  ;;  %v1249_v41 = vadd.f32 %v1245_v54, %v2976_v58  ;;  %v1464_v18 = vld [vmem:[#allocation4 + $0x20] sm:$0xff]  ;;  %v1391_v54 = vld [vmem:[#allocation4 + $0x70] sm:$0xff] }
 0x351   : > { %v1241_v53 = vpop.permute.xlu0 %1240  ;;  %v1499_v17 = vpop.permute.xlu1 %1498 }
 0x352   : > { %1253 = vst.msk [vmem:[#allocation4 + $0x30] sm:$0xff] %vm235_vm3, %v1249_v41  ;;  %v1246_v5 = vmul.f32 %v1241_v53, %v1222_v55  ;;  %v1588_v42 = vsel %vm235_vm3, %v1573_v6, 0  ;;  %v1560_v58 = vmul.f32 %v1499_v17, %v1464_v18 }
 0x353   : > { %1954 = vmatpush3.bf16.xpose.msra.mxu1 %v1588_v42  ;;  %v1392_v42 = vld [vmem:[#allocation4 + $0x78] sm:$0xff] }
 0x354   : > { %v1250_v14 = vadd.f32 %v1246_v5, %v2978_v46  ;;  %1959 = vmatprep.subr.bf16.mxu1 %v3208_v11 }
 0x355   : > { %v1504_v26 = vpop.permute.xlu0 %1503  ;;  %v1465_v28 = vld [vmem:[#allocation4 + $0x28] sm:$0xff]  ;;  %v1311_v44 = vpop.permute.xlu1 %1310 }
 0x356   : > { %1254 = vst.msk [vmem:[#allocation4 + $0x38] sm:$0xff] %vm235_vm3, %v1250_v14  ;;  %v1561_v31 = vmul.f32 %v1504_v26, %v1465_v28  ;;  %v1328_v20 = vmul.f32 %v1311_v44, %v1304_v56 }
 0x358   : > { %v1574_v63 = vpack.c.bf16 %v1561_v31, %v1560_v58  ;;  %v1332_v60 = vadd.f32 %v1328_v20, %v2981_v33 }
 0x359   : > { %v1316_v43 = vpop.permute.xlu0 %1315  ;;  %v1509_v46 = vpop.permute.xlu1 %1508  ;;  %v1466_v62 = vld [vmem:[#allocation4 + $0x30] sm:$0xff] }
 0x35a   : > { %1336 = vst.msk [vmem:[#allocation4 + $0x40] sm:$0xff] %vm235_vm3, %v1332_v60  ;;  %v1329_v45 = vmul.f32 %v1316_v43, %v1305_v40  ;;  %1956 = vmatmul.mubr.msk.bf16.vlgmr.msra.gmra.mrb[32].mxu1 %vm235_vm3, %v1580_v47  ;;  %v1638_v57 = vsel %vm235_vm3, %v1574_v63, 0  ;;  %v1562_v49 = vmul.f32 %v1509_v46, %v1466_v62 }
 0x35b   : > { %1960 = vmatpush3.bf16.xpose.msra.mxu1 %v1638_v57  ;;  %1963 = vmatprep.mubr.msk.bf16.mxu1 %vm2274_vm4, %v3208_v11 }
 0x35c   : > { %v1333_v1 = vadd.f32 %v1329_v45, %v2983_v61  ;;  %1961 = vmatprep.subr.bf16.mxu1 %v3208_v11 }
 0x35d   : > { %v1514_v33 = vpop.permute.xlu0 %1513  ;;  %v1467_v24 = vld [vmem:[#allocation4 + $0x38] sm:$0xff]  ;;  %v1321_v51 = vpop.permute.xlu1 %1320 }
 0x35e   : > { %1337 = vst.msk [vmem:[#allocation4 + $0x48] sm:$0xff] %vm235_vm3, %v1333_v1  ;;  %v1563_v36 = vmul.f32 %v1514_v33, %v1467_v24  ;;  %v1330_v32 = vmul.f32 %v1321_v51, %v1306_v23  ;;  %v1929_v33 = vld [vmem:[%s3118_s2 + $0x6] sm:$0x3] }
 0x360   : > { %v1575_v21 = vpack.c.bf16 %v1563_v36, %v1562_v49  ;;  %v1334_v59 = vadd.f32 %v1330_v32, %v2986_v9 }
 0x361   : > { %v1326_v2 = vpop.permute.xlu0 %1325  ;;  %v1519_v3 = vpop.permute.xlu1 %1518  ;;  %v1468_v27 = vld [vmem:[#allocation4 + $0x40] sm:$0xff] }
 0x362   : > { %1338 = vst.msk [vmem:[#allocation4 + $0x50] sm:$0xff] %vm235_vm3, %v1334_v59  ;;  %v1331_v8 = vmul.f32 %v1326_v2, %v1307_v25  ;;  %v1641_v61 = vsel %vm235_vm3, %v1575_v21, 0  ;;  %v1564_v9 = vmul.f32 %v1519_v3, %v1468_v27 }
 0x363   : > { %1962 = vmatpush3.bf16.xpose.msra.mxu1 %v1641_v61 }
 0x364   : > { %v1335_v16 = vadd.f32 %v1331_v8, %v2988_v13  ;;  %1967 = vmatprep.subr.bf16.mxu1 %v3208_v11 }
 0x365   : > { %v1524_v7 = vpop.permute.xlu0 %1523  ;;  %v1469_v52 = vld [vmem:[#allocation4 + $0x48] sm:$0xff]  ;;  %v1396_v19 = vpop.permute.xlu1 %1395 }
 0x366   : > { %1339 = vst.msk [vmem:[#allocation4 + $0x58] sm:$0xff] %vm235_vm3, %v1335_v16  ;;  %v1565_v34 = vmul.f32 %v1524_v7, %v1469_v52  ;;  %v1413_v37 = vmul.f32 %v1396_v19, %v1389_v50 }
 0x368   : > { %v1576_v39 = vpack.c.bf16 %v1565_v34, %v1564_v9  ;;  %v1417_v10 = vadd.f32 %v1413_v37, %v2990_v0 }
 0x369   : > { %v1401_v15 = vpop.permute.xlu0 %1400  ;;  %v1529_v13 = vpop.permute.xlu1 %1528  ;;  %v1470_v4 = vld [vmem:[#allocation4 + $0x50] sm:$0xff] }
 0x36a   : > { %1421 = vst.msk [vmem:[#allocation4 + $0x60] sm:$0xff] %vm235_vm3, %v1417_v10  ;;  %v1414_v29 = vmul.f32 %v1401_v15, %v1390_v22  ;;  %1964 = vmatmul.mubr.msk.bf16.vlgmr.msra.gmra.mrb[36].mxu1 %vm235_vm3, %v1923_v38  ;;  %v1691_v30 = vsel %vm235_vm3, %v1576_v39, 0  ;;  %v1566_v53 = vmul.f32 %v1529_v13, %v1470_v4 }
 0x36b   : > { %1968 = vmatpush3.bf16.xpose.msra.mxu1 %v1691_v30  ;;  %1971 = vmatprep.mubr.msk.bf16.mxu1 %vm2274_vm4, %v3208_v11 }
 0x36c   : > { %v1418_v55 = vadd.f32 %v1414_v29, %v2992_v12  ;;  %1969 = vmatprep.subr.bf16.mxu1 %v3208_v11 }
 0x36d   : > { %v1534_v0 = vpop.permute.xlu0 %1533  ;;  %v1471_v6 = vld [vmem:[#allocation4 + $0x58] sm:$0xff]  ;;  %v1406_v41 = vpop.permute.xlu1 %1405 }
 0x36e   : > { %1422 = vst.msk [vmem:[#allocation4 + $0x68] sm:$0xff] %vm235_vm3, %v1418_v55  ;;  %v1567_v17 = vmul.f32 %v1534_v0, %v1471_v6  ;;  %v1415_v5 = vmul.f32 %v1406_v41, %v1391_v54 }
 0x370   : > { %v1577_v18 = vpack.c.bf16 %v1567_v17, %v1566_v53  ;;  %v1419_v56 = vadd.f32 %v1415_v5, %v2994_v35  ;;  %v1926_v35 = vld [vmem:[%s3118_s2 + $0x4] sm:$0x3] }
 0x371   : > { %v1411_v14 = vpop.permute.xlu0 %1410  ;;  %v1539_v28 = vpop.permute.xlu1 %1538  ;;  %v1472_v44 = vld [vmem:[#allocation4 + $0x60] sm:$0xff] }
 0x372   : > { %1423 = vst.msk [vmem:[#allocation4 + $0x70] sm:$0xff] %vm235_vm3, %v1419_v56  ;;  %v1416_v26 = vmul.f32 %v1411_v14, %v1392_v42  ;;  %v1694_v12 = vsel %vm235_vm3, %v1577_v18, 0  ;;  %v1568_v40 = vmul.f32 %v1539_v28, %v1472_v44 }
 0x373   : > { %1970 = vmatpush3.bf16.xpose.msra.mxu1 %v1694_v12 }
 0x374   : > { %v1420_v58 = vadd.f32 %v1416_v26, %v2996_v48  ;;  %1975 = vmatprep.subr.bf16.mxu1 %v3208_v11 }
 0x375   : > { %v1544_v31 = vpop.permute.xlu0 %1543  ;;  %v1473_v20 = vld [vmem:[#allocation4 + $0x68] sm:$0xff] }
 0x376   : > { %1424 = vst.msk [vmem:[#allocation4 + $0x78] sm:$0xff] %vm235_vm3, %v1420_v58  ;;  %v1569_v47 = vmul.f32 %v1544_v31, %v1473_v20 }
 0x378   : > { %v1578_v63 = vpack.c.bf16 %v1569_v47, %v1568_v40  ;;  %v1549_v48 = vpop.permute.xlu1 %1548 }
 0x379   : > { %v1474_v43 = vld [vmem:[#allocation4 + $0x70] sm:$0xff] }
 0x37a   : > { %1972 = vmatmul.mubr.msk.bf16.vlgmr.msra.gmra.mrb[40].mxu1 %vm235_vm3, %v1926_v35  ;;  %v1744_v60 = vsel %vm235_vm3, %v1578_v63, 0  ;;  %v1570_v57 = vmul.f32 %v1549_v48, %v1474_v43 }
 0x37b   : > { %1976 = vmatpush3.bf16.xpose.msra.mxu1 %v1744_v60  ;;  %1979 = vmatprep.mubr.msk.bf16.mxu1 %vm2274_vm4, %v3208_v11 }
 0x37c   : > { %1977 = vmatprep.subr.bf16.mxu1 %v3208_v11 }
 0x37d   : > { %v1475_v45 = vld [vmem:[#allocation4 + $0x78] sm:$0xff] }
 0x3a7   : > { %v1554_v46 = vpop.permute.xlu0 %1553 }
 0x3a8   : > { %v1571_v62 = vmul.f32 %v1554_v46, %v1475_v45 }
 0x3aa   : > { %v1579_v23 = vpack.c.bf16 %v1571_v62, %v1570_v57 }
 0x3ac   : > { %v1747_v1 = vsel %vm235_vm3, %v1579_v23, 0 }
 0x3ad   : > { %1978 = vmatpush3.bf16.xpose.msra.mxu1 %v1747_v1 }
 0x3b4   : > { %1980 = vmatmul.mubr.msk.bf16.vlgmr.msra.gmra.mrb[44].mxu1 %vm235_vm3, %v1929_v33 }
 0x42d   : > { %v1624_v11 = vpop.f32.mrb[32].mxu1 }
 0x42e   : > { %1631 = vst.msk [vmem:[%s186_s18] sm:$0xf] %vm1630_vm5, %v1624_v11  ;;  %v1957_v24 = vpop.f32.mrb[33].mxu1 }
 0x42f   : > { %v1627_v51 = vpop.f32.mrb[34].mxu1 }
 0x430   : > { %v1958_v49 = vpop.f32.mrb[35].mxu1 }
 0x43d   : > { %v1677_v36 = vpop.f32.mrb[36].mxu1 }
 0x43e   : > { %1925 = vst.msk [vmem:[%s186_s18 + $0x4] sm:$0xf] %vm1630_vm5, %v1677_v36  ;;  %v1965_v32 = vpop.f32.mrb[37].mxu1 }
 0x43f   : > { %v1680_v25 = vpop.f32.mrb[38].mxu1 }
 0x440   : > { %v1966_v21 = vpop.f32.mrb[39].mxu1 }
 0x44d   : > { %v1730_v59 = vpop.f32.mrb[40].mxu1 }
 0x44e   : > { %1928 = vst.msk [vmem:[%s186_s18 + $0x8] sm:$0xf] %vm1630_vm5, %v1730_v59  ;;  %v1973_v2 = vpop.f32.mrb[41].mxu1 }
 0x44f   : > { %v1733_v3 = vpop.f32.mrb[42].mxu1 }
 0x450   : > { %v1974_v8 = vpop.f32.mrb[43].mxu1 }
 0x487   : > { %v1783_v61 = vpop.f32.mrb[44].mxu1 }
 0x488   : > { %1931 = vst.msk [vmem:[%s186_s18 + $0xc] sm:$0xf] %vm1630_vm5, %v1783_v61  ;;  %v1981_v27 = vpop.f32.mrb[45].mxu1 }
 0x489   : > { %v1786_v50 = vpop.f32.mrb[46].mxu1 }
 0x48a   : > { %2204 = shalt.err (!%p2201_p5)
}
 0x48b   : > { %s2205_s5 = scalar_lea.hbm %s3067_s27, 256  ;;  %s2209_s8 = scalar_lea.hbm %s3119_s3, 512 }
 0x48c   : > { %p2206_p6 = scmp.ne.s32.totalorder %s3067_s27, %s2205_s5  ;;  %p2210_p10 = scmp.lt.u32.totalorder %s3067_s27, %s3119_s3 }
 0x48d   : > { %p2211_p11 = scmp.lt.u32.totalorder %s2209_s8, %s2205_s5  ;;  %p2213_p13 = scmp.lt.u32.totalorder %s2205_s5, %s3067_s27 }
 0x48e   : > { %p2207_p7 = pnand %p2206_p6, %p2338_p4 }
 0x48f   : > { %p2212_p12 = por %p2211_p11, %p2210_p10 }
 0x490   : > { %p2208_p9 = pneg %p2207_p7 }
 0x491   : > { %p2214_p0 = por %p2213_p13, %p2212_p12 }
 0x493   : > { %p2215_p1 = pnand %p2214_p0, %p2208_p9 }
 0x495   : > { %2218 = shalt.err (!%p2215_p1)
}
 0x496   : > { %s2276_s11 = smov 64   ;;  %s2277_s18 = smov 4   ;;  %v1982_v16 = vpop.f32.mrb[47].mxu1 }
 0x497   : > { %1983 = dma.vmem_to_hbm [thread:$0]  (%p2338_p4), %s3062_s19, 256, %s3067_s27, %s3070_s28, %s2276_s11, %s2276_s11, %s2277_s18  }
 0x498 PF: > { %p1989_p2 = scmp.ge.s32.totalorder %s2269_s17, 2  ;;  %s1820_s21 = sand.u32 1, %s2249_s12  }
 0x499   : > { %s1821_s23 = scalar_lea.sflag [#allocation6], %s1820_s21 }
 0x49a   : > { %p1986_p3 = pnand %p1989_p2, %p2345_p8 }
 0x49c   : > { %2244 = dma.done.wait (!%p1986_p3), %s1821_s23, 256  }
 0x49d   : > { %2246 = vsyncadd (!%p1986_p3), %s1821_s23, 4294967040  ;;  %s16_s17 = sadd.s32 1, %s2269_s17   ;;  %s3257_s12 = smov %s2253_s13 }
 0x49e   : > { %p13_p5 = scmp.ge.s32.totalorder %s16_s17, 4   ;;  %s3258_s13 = smov %s2257_s14 }
 0x49f   : > { %s3259_s14 = smov %s2351_s25  ;;  %s3260_s15 = smov %s2265_s16 }
 0x4a0   : > { %s3261_s16 = smov %s3263_s20  ;;  %15 = sbr.rel (!%p13_p5) target bundleno = 4 (0x4), region = 81 }
 0x4a7   :  { %1826 = vsyncpa [#allocation6], 1 }
 0x4a8   :  { %1828 = vsyncpa [#allocation6 + $0x1], 1 }

</bundles_post_ra>
